<compile_context>
chip_gen: v7x
topology: tpu7x:2x2x1
jax: 0.10.0
libtpu: 0.0.40
codegen_flags: <defaults>
</compile_context>

<pallas_src>
import functools

import jax
import jax.numpy as jnp
from jax.experimental import pallas as pl
from jax.experimental.pallas import tpu as pltpu

NUM_TILES = 8
OBJ_CLASSES = 3
INPUT_SIZE = NUM_TILES * OBJ_CLASSES  # 24
HIDDEN = 128
OUT_FEATURES = 8
LEAKY_SLOPE = 0.01  # nn.LeakyReLU default negative_slope


def _leaky_relu(z):
    return jnp.where(z > 0, z, LEAKY_SLOPE * z)


# ----------------------------------------------------------------------------
# Fused kernel: one grid step == one branch (LSTM recurrence + FC head).
# LSTM gate order follows PyTorch: [i, f, g, o].
# ----------------------------------------------------------------------------
def _fused_rnn_kernel(x_ref, wih_ref, whh_ref, bias_ref,
                      w1_ref, b1_ref, bns_ref, bnh_ref,
                      w2_ref, b2_ref, w3_ref, b3_ref,
                      out_ref, *, seq_len, batch_pad):
    H = whh_ref.shape[1]

    x = x_ref[0]            # (T*Bp, D)  time-major, batch-padded sequence of this branch
    w_ih = wih_ref[0]       # (D, 4H)
    w_hh = whh_ref[0]       # (H, 4H)
    bias = bias_ref[0]      # (1, 4H)  (= b_ih + b_hh)

    # Hoisted, time-independent input projection: single MXU push + one bias add.
    x_proj = jnp.dot(x, w_ih, preferred_element_type=jnp.float32) + bias  # (T*Bp, 4H)

    h = jnp.zeros((batch_pad, H), jnp.float32)
    c = jnp.zeros((batch_pad, H), jnp.float32)

    # Fully unrolled recurrence: seq_len is a small static Python int, so every
    # slice below is static and the LLO scheduler sees the whole serial chain.
    for t in range(seq_len):
        gates = x_proj[t * batch_pad:(t + 1) * batch_pad, :] + jnp.dot(
            h, w_hh, preferred_element_type=jnp.float32)           # (Bp, 4H)
        i_g = jax.nn.sigmoid(gates[:, 0 * H:1 * H])
        f_g = jax.nn.sigmoid(gates[:, 1 * H:2 * H])
        g_g = jnp.tanh(gates[:, 2 * H:3 * H])
        o_g = jax.nn.sigmoid(gates[:, 3 * H:4 * H])
        c = f_g * c + i_g * g_g
        h = o_g * jnp.tanh(c)

    # FC head epilogue (eval mode: BatchNorm uses running stats, Dropout = id).
    z1 = _leaky_relu(
        jnp.dot(h, w1_ref[0], preferred_element_type=jnp.float32) + b1_ref[0])
    z1 = z1 * bns_ref[0] + bnh_ref[0]                 # BatchNorm1d (eval stats)
    z2 = _leaky_relu(
        jnp.dot(z1, w2_ref[0], preferred_element_type=jnp.float32) + b2_ref[0])
    # TODO(synk): Dropout(0.4) is identity in eval mode; training-mode stochastic
    # masking (pltpu.prng_random_bits) intentionally not applied here.
    out = jnp.dot(z2, w3_ref[0], preferred_element_type=jnp.float32) + b3_ref[0]

    # Drop the zero-padded batch rows at the final (tiny) store.
    out_ref[0] = out[:out_ref.shape[1], :].astype(out_ref.dtype)


def _fused_forward(params, x_branch_major, batch, seq_len, batch_pad):
    D = INPUT_SIZE
    H = HIDDEN
    kernel = functools.partial(
        _fused_rnn_kernel, seq_len=seq_len, batch_pad=batch_pad)

    # Explicit specs (no late-binding lambdas over loop variables).
    in_specs = [
        pl.BlockSpec((1, seq_len * batch_pad, D), lambda br: (br, 0, 0)),  # x
        pl.BlockSpec((1, D, 4 * H), lambda br: (br, 0, 0)),                # w_ih
        pl.BlockSpec((1, H, 4 * H), lambda br: (br, 0, 0)),                # w_hh
        pl.BlockSpec((1, 1, 4 * H), lambda br: (br, 0, 0)),                # bias
        pl.BlockSpec((1, H, 64), lambda br: (br, 0, 0)),                   # w1
        pl.BlockSpec((1, 1, 64), lambda br: (br, 0, 0)),                   # b1
        pl.BlockSpec((1, 1, 64), lambda br: (br, 0, 0)),                   # bn_scale
        pl.BlockSpec((1, 1, 64), lambda br: (br, 0, 0)),                   # bn_shift
        pl.BlockSpec((1, 64, 32), lambda br: (br, 0, 0)),                  # w2
        pl.BlockSpec((1, 1, 32), lambda br: (br, 0, 0)),                   # b2
        pl.BlockSpec((1, 32, OUT_FEATURES), lambda br: (br, 0, 0)),        # w3
        pl.BlockSpec((1, 1, OUT_FEATURES), lambda br: (br, 0, 0)),         # b3
    ]

    return pl.pallas_call(
        kernel,
        out_shape=jax.ShapeDtypeStruct((2, batch, OUT_FEATURES), jnp.float32),
        grid_spec=pltpu.PrefetchScalarGridSpec(
            num_scalar_prefetch=0,
            grid=(2,),  # branch axis: independent -> "parallel" (2-TC split on v7x)
            in_specs=in_specs,
            out_specs=pl.BlockSpec((1, batch, OUT_FEATURES),
                                   lambda br: (br, 0, 0)),
        ),
        compiler_params=pltpu.CompilerParams(
            dimension_semantics=("parallel",)),
    )(x_branch_major,
      params["w_ih"], params["w_hh"], params["bias"],
      params["w1"], params["b1"], params["bn_scale"], params["bn_shift"],
      params["w2"], params["b2"], params["w3"], params["b3"])


# ----------------------------------------------------------------------------
# Parameter init (deterministic, mirrors PyTorch default uniform ranges).
# All per-branch tensors are stacked along a leading branch axis of size 2.
# ----------------------------------------------------------------------------
def _uniform(key, shape, bound):
    return jax.random.uniform(key, shape, jnp.float32, -bound, bound)


def _init_branch_params(key):
    ks = jax.random.split(key, 10)
    kH = 1.0 / jnp.sqrt(HIDDEN)
    eps = 1e-5
    gamma = jnp.ones((1, 64), jnp.float32)
    beta = jnp.zeros((1, 64), jnp.float32)
    run_mean = jnp.zeros((1, 64), jnp.float32)
    run_var = jnp.ones((1, 64), jnp.float32)
    bn_scale = gamma / jnp.sqrt(run_var + eps)
    bn_shift = beta - run_mean * bn_scale
    return {
        # LSTM weights stored pre-transposed: (D, 4H), (H, 4H); bias = b_ih + b_hh.
        "w_ih": _uniform(ks[0], (INPUT_SIZE, 4 * HIDDEN), kH),
        "w_hh": _uniform(ks[1], (HIDDEN, 4 * HIDDEN), kH),
        "bias": (_uniform(ks[2], (1, 4 * HIDDEN), kH)
                 + _uniform(ks[3], (1, 4 * HIDDEN), kH)),
        "w1": _uniform(ks[4], (HIDDEN, 64), 1.0 / jnp.sqrt(128.0)),
        "b1": _uniform(ks[5], (1, 64), 1.0 / jnp.sqrt(128.0)),
        "bn_scale": bn_scale,
        "bn_shift": bn_shift,
        "w2": _uniform(ks[6], (64, 32), 1.0 / jnp.sqrt(64.0)),
        "b2": _uniform(ks[7], (1, 32), 1.0 / jnp.sqrt(64.0)),
        "w3": _uniform(ks[8], (32, OUT_FEATURES), 1.0 / jnp.sqrt(32.0)),
        "b3": _uniform(ks[9], (1, OUT_FEATURES), 1.0 / jnp.sqrt(32.0)),
    }


def init_params(key):
    kx, ky = jax.random.split(key)
    px = _init_branch_params(kx)
    py = _init_branch_params(ky)
    return jax.tree_util.tree_map(lambda a, b: jnp.stack([a, b], axis=0), px, py)


# ----------------------------------------------------------------------------
# Full forward (single fused pallas_call).
# ----------------------------------------------------------------------------
@jax.jit
def rnn_forward(params, x):
    # x: (B, T, 2, INPUT_SIZE) -- PyTorch batch_first layout.
    B, T, _, D = x.shape
    Bp = max(8, -(-B // 8) * 8)  # pad batch to a sublane multiple

    # Single tiny layout fusion on the host side: branch-major, time-major,
    # batch-padded, then flattened to (2, T*Bp, D) so all kernel slices are
    # static and sublane-aligned.
    xr = jnp.transpose(x.astype(jnp.float32), (2, 1, 0, 3))      # (2, T, B, D)
    xr = jnp.pad(xr, ((0, 0), (0, 0), (0, Bp - B), (0, 0)))      # (2, T, Bp, D)
    xr = xr.reshape(2, T * Bp, D)                                # (2, T*Bp, D)

    out = _fused_forward(params, xr, B, T, Bp)                   # (2, B, 8)
    return out[0], out[1]


if __name__ == "__main__":
    key = jax.random.PRNGKey(0)
    k_param, k_data = jax.random.split(key)

    B, T = 2, 8
    params = init_params(k_param)
    x = jax.random.normal(k_data, (B, T, 2, INPUT_SIZE), jnp.float32)

    fc_out_x, fc_out_y = rnn_forward(params, x)
    jax.block_until_ready((fc_out_x, fc_out_y))

    assert fc_out_x.shape == (B, OUT_FEATURES) and fc_out_y.shape == (B, OUT_FEATURES)
    assert jnp.all(jnp.isfinite(fc_out_x)) and jnp.all(jnp.isfinite(fc_out_y))
    print("KERNEL_OK")
</pallas_src>

<mosaic_0001>
module attributes {stable_mosaic.version = 11 : i64} {
  func.func @_fused_rnn_kernel(%arg0: i32, %arg1: memref<1x64x24xf32, #tpu.memory_space<vmem>>, %arg2: memref<1x24x512xf32, #tpu.memory_space<vmem>>, %arg3: memref<1x128x512xf32, #tpu.memory_space<vmem>>, %arg4: memref<1x1x512xf32, #tpu.memory_space<vmem>>, %arg5: memref<1x128x64xf32, #tpu.memory_space<vmem>>, %arg6: memref<1x1x64xf32, #tpu.memory_space<vmem>>, %arg7: memref<1x1x64xf32, #tpu.memory_space<vmem>>, %arg8: memref<1x1x64xf32, #tpu.memory_space<vmem>>, %arg9: memref<1x64x32xf32, #tpu.memory_space<vmem>>, %arg10: memref<1x1x32xf32, #tpu.memory_space<vmem>>, %arg11: memref<1x32x8xf32, #tpu.memory_space<vmem>>, %arg12: memref<1x1x8xf32, #tpu.memory_space<vmem>>, %arg13: memref<1x2x8xf32, #tpu.memory_space<vmem>>) attributes {dimension_semantics = [#tpu.dimension_semantics<parallel>], iteration_bounds = array<i64: 2>, scalar_prefetch = 0 : i64, scratch_operands = 0 : i64, tpu.core_type = #tpu.core_type<tc>, window_params = [{transform_indices = @transform_0, window_bounds = array<i64: 1, 64, 24>}, {transform_indices = @transform_1, window_bounds = array<i64: 1, 24, 512>}, {transform_indices = @transform_2, window_bounds = array<i64: 1, 128, 512>}, {transform_indices = @transform_3, window_bounds = array<i64: 1, 1, 512>}, {transform_indices = @transform_4, window_bounds = array<i64: 1, 128, 64>}, {transform_indices = @transform_5, window_bounds = array<i64: 1, 1, 64>}, {transform_indices = @transform_6, window_bounds = array<i64: 1, 1, 64>}, {transform_indices = @transform_7, window_bounds = array<i64: 1, 1, 64>}, {transform_indices = @transform_8, window_bounds = array<i64: 1, 64, 32>}, {transform_indices = @transform_9, window_bounds = array<i64: 1, 1, 32>}, {transform_indices = @transform_10, window_bounds = array<i64: 1, 32, 8>}, {transform_indices = @transform_11, window_bounds = array<i64: 1, 1, 8>}, {transform_indices = @transform_12, window_bounds = array<i64: 1, 2, 8>}]} {
    %c0 = arith.constant 0 : index
    %c0_0 = arith.constant 0 : index
    %c0_1 = arith.constant 0 : index
    %0 = vector.load %arg1[%c0, %c0_0, %c0_1] : memref<1x64x24xf32, #tpu.memory_space<vmem>>, vector<1x64x24xf32>
    %1 = vector.shape_cast %0 : vector<1x64x24xf32> to vector<64x24xf32>
    %c0_2 = arith.constant 0 : index
    %c0_3 = arith.constant 0 : index
    %c0_4 = arith.constant 0 : index
    %2 = vector.load %arg2[%c0_2, %c0_3, %c0_4] : memref<1x24x512xf32, #tpu.memory_space<vmem>>, vector<1x24x512xf32>
    %3 = vector.shape_cast %2 : vector<1x24x512xf32> to vector<24x512xf32>
    %c0_5 = arith.constant 0 : index
    %c0_6 = arith.constant 0 : index
    %c0_7 = arith.constant 0 : index
    %4 = vector.load %arg3[%c0_5, %c0_6, %c0_7] : memref<1x128x512xf32, #tpu.memory_space<vmem>>, vector<1x128x512xf32>
    %5 = vector.shape_cast %4 : vector<1x128x512xf32> to vector<128x512xf32>
    %c0_8 = arith.constant 0 : index
    %c0_9 = arith.constant 0 : index
    %c0_10 = arith.constant 0 : index
    %6 = vector.load %arg4[%c0_8, %c0_9, %c0_10] : memref<1x1x512xf32, #tpu.memory_space<vmem>>, vector<1x1x512xf32>
    %7 = vector.shape_cast %6 : vector<1x1x512xf32> to vector<1x512xf32>
    %cst = arith.constant dense<0.000000e+00> : vector<64x512xf32>
    %8 = tpu.matmul %1, %3, %cst {dimension_numbers = #tpu.dot_dimension_numbers<[1], [0], [0], [1], [0, 0, 1, 1], [], []>} : vector<64x24xf32>, vector<24x512xf32>, vector<64x512xf32> -> vector<64x512xf32>
    %9 = vector.broadcast %7 : vector<1x512xf32> to vector<64x512xf32>
    %10 = arith.addf %8, %9 : vector<64x512xf32>
    %cst_11 = arith.constant 0.000000e+00 : f32
    %11 = vector.broadcast %cst_11 : f32 to vector<8x128xf32>
    %cst_12 = arith.constant 0.000000e+00 : f32
    %12 = vector.broadcast %cst_12 : f32 to vector<8x128xf32>
    %13 = vector.extract_strided_slice %10 {offsets = [0, 0], sizes = [8, 512], strides = [1, 1]} : vector<64x512xf32> to vector<8x512xf32>
    %cst_13 = arith.constant dense<0.000000e+00> : vector<8x512xf32>
    %14 = tpu.matmul %11, %5, %cst_13 {dimension_numbers = #tpu.dot_dimension_numbers<[1], [0], [0], [1], [0, 0, 1, 1], [], []>} : vector<8x128xf32>, vector<128x512xf32>, vector<8x512xf32> -> vector<8x512xf32>
    %15 = arith.addf %13, %14 : vector<8x512xf32>
    %16 = vector.extract_strided_slice %15 {offsets = [0, 0], sizes = [8, 128], strides = [1, 1]} : vector<8x512xf32> to vector<8x128xf32>
    %17 = arith.negf %16 : vector<8x128xf32>
    %18 = math.exp %17 : vector<8x128xf32>
    %cst_14 = arith.constant 1.000000e+00 : f32
    %19 = vector.broadcast %cst_14 : f32 to vector<8x128xf32>
    %20 = arith.addf %19, %18 : vector<8x128xf32>
    %21 = arith.divf %19, %20 : vector<8x128xf32>
    %22 = vector.extract_strided_slice %15 {offsets = [0, 128], sizes = [8, 128], strides = [1, 1]} : vector<8x512xf32> to vector<8x128xf32>
    %23 = arith.negf %22 : vector<8x128xf32>
    %24 = math.exp %23 : vector<8x128xf32>
    %cst_15 = arith.constant 1.000000e+00 : f32
    %25 = vector.broadcast %cst_15 : f32 to vector<8x128xf32>
    %26 = arith.addf %25, %24 : vector<8x128xf32>
    %27 = arith.divf %25, %26 : vector<8x128xf32>
    %28 = vector.extract_strided_slice %15 {offsets = [0, 256], sizes = [8, 128], strides = [1, 1]} : vector<8x512xf32> to vector<8x128xf32>
    %29 = math.tanh %28 : vector<8x128xf32>
    %30 = vector.extract_strided_slice %15 {offsets = [0, 384], sizes = [8, 128], strides = [1, 1]} : vector<8x512xf32> to vector<8x128xf32>
    %31 = arith.negf %30 : vector<8x128xf32>
    %32 = math.exp %31 : vector<8x128xf32>
    %cst_16 = arith.constant 1.000000e+00 : f32
    %33 = vector.broadcast %cst_16 : f32 to vector<8x128xf32>
    %34 = arith.addf %33, %32 : vector<8x128xf32>
    %35 = arith.divf %33, %34 : vector<8x128xf32>
    %36 = arith.mulf %27, %12 : vector<8x128xf32>
    %37 = arith.mulf %21, %29 : vector<8x128xf32>
    %38 = arith.addf %36, %37 : vector<8x128xf32>
    %39 = math.tanh %38 : vector<8x128xf32>
    %40 = arith.mulf %35, %39 : vector<8x128xf32>
    %41 = vector.extract_strided_slice %10 {offsets = [8, 0], sizes = [8, 512], strides = [1, 1]} : vector<64x512xf32> to vector<8x512xf32>
    %cst_17 = arith.constant dense<0.000000e+00> : vector<8x512xf32>
    %42 = tpu.matmul %40, %5, %cst_17 {dimension_numbers = #tpu.dot_dimension_numbers<[1], [0], [0], [1], [0, 0, 1, 1], [], []>} : vector<8x128xf32>, vector<128x512xf32>, vector<8x512xf32> -> vector<8x512xf32>
    %43 = arith.addf %41, %42 : vector<8x512xf32>
    %44 = vector.extract_strided_slice %43 {offsets = [0, 0], sizes = [8, 128], strides = [1, 1]} : vector<8x512xf32> to vector<8x128xf32>
    %45 = arith.negf %44 : vector<8x128xf32>
    %46 = math.exp %45 : vector<8x128xf32>
    %cst_18 = arith.constant 1.000000e+00 : f32
    %47 = vector.broadcast %cst_18 : f32 to vector<8x128xf32>
    %48 = arith.addf %47, %46 : vector<8x128xf32>
    %49 = arith.divf %47, %48 : vector<8x128xf32>
    %50 = vector.extract_strided_slice %43 {offsets = [0, 128], sizes = [8, 128], strides = [1, 1]} : vector<8x512xf32> to vector<8x128xf32>
    %51 = arith.negf %50 : vector<8x128xf32>
    %52 = math.exp %51 : vector<8x128xf32>
    %cst_19 = arith.constant 1.000000e+00 : f32
    %53 = vector.broadcast %cst_19 : f32 to vector<8x128xf32>
    %54 = arith.addf %53, %52 : vector<8x128xf32>
    %55 = arith.divf %53, %54 : vector<8x128xf32>
    %56 = vector.extract_strided_slice %43 {offsets = [0, 256], sizes = [8, 128], strides = [1, 1]} : vector<8x512xf32> to vector<8x128xf32>
    %57 = math.tanh %56 : vector<8x128xf32>
    %58 = vector.extract_strided_slice %43 {offsets = [0, 384], sizes = [8, 128], strides = [1, 1]} : vector<8x512xf32> to vector<8x128xf32>
    %59 = arith.negf %58 : vector<8x128xf32>
    %60 = math.exp %59 : vector<8x128xf32>
    %cst_20 = arith.constant 1.000000e+00 : f32
    %61 = vector.broadcast %cst_20 : f32 to vector<8x128xf32>
    %62 = arith.addf %61, %60 : vector<8x128xf32>
    %63 = arith.divf %61, %62 : vector<8x128xf32>
    %64 = arith.mulf %55, %38 : vector<8x128xf32>
    %65 = arith.mulf %49, %57 : vector<8x128xf32>
    %66 = arith.addf %64, %65 : vector<8x128xf32>
    %67 = math.tanh %66 : vector<8x128xf32>
    %68 = arith.mulf %63, %67 : vector<8x128xf32>
    %69 = vector.extract_strided_slice %10 {offsets = [16, 0], sizes = [8, 512], strides = [1, 1]} : vector<64x512xf32> to vector<8x512xf32>
    %cst_21 = arith.constant dense<0.000000e+00> : vector<8x512xf32>
    %70 = tpu.matmul %68, %5, %cst_21 {dimension_numbers = #tpu.dot_dimension_numbers<[1], [0], [0], [1], [0, 0, 1, 1], [], []>} : vector<8x128xf32>, vector<128x512xf32>, vector<8x512xf32> -> vector<8x512xf32>
    %71 = arith.addf %69, %70 : vector<8x512xf32>
    %72 = vector.extract_strided_slice %71 {offsets = [0, 0], sizes = [8, 128], strides = [1, 1]} : vector<8x512xf32> to vector<8x128xf32>
    %73 = arith.negf %72 : vector<8x128xf32>
    %74 = math.exp %73 : vector<8x128xf32>
    %cst_22 = arith.constant 1.000000e+00 : f32
    %75 = vector.broadcast %cst_22 : f32 to vector<8x128xf32>
    %76 = arith.addf %75, %74 : vector<8x128xf32>
    %77 = arith.divf %75, %76 : vector<8x128xf32>
    %78 = vector.extract_strided_slice %71 {offsets = [0, 128], sizes = [8, 128], strides = [1, 1]} : vector<8x512xf32> to vector<8x128xf32>
    %79 = arith.negf %78 : vector<8x128xf32>
    %80 = math.exp %79 : vector<8x128xf32>
    %cst_23 = arith.constant 1.000000e+00 : f32
    %81 = vector.broadcast %cst_23 : f32 to vector<8x128xf32>
    %82 = arith.addf %81, %80 : vector<8x128xf32>
    %83 = arith.divf %81, %82 : vector<8x128xf32>
    %84 = vector.extract_strided_slice %71 {offsets = [0, 256], sizes = [8, 128], strides = [1, 1]} : vector<8x512xf32> to vector<8x128xf32>
    %85 = math.tanh %84 : vector<8x128xf32>
    %86 = vector.extract_strided_slice %71 {offsets = [0, 384], sizes = [8, 128], strides = [1, 1]} : vector<8x512xf32> to vector<8x128xf32>
    %87 = arith.negf %86 : vector<8x128xf32>
    %88 = math.exp %87 : vector<8x128xf32>
    %cst_24 = arith.constant 1.000000e+00 : f32
    %89 = vector.broadcast %cst_24 : f32 to vector<8x128xf32>
    %90 = arith.addf %89, %88 : vector<8x128xf32>
    %91 = arith.divf %89, %90 : vector<8x128xf32>
    %92 = arith.mulf %83, %66 : vector<8x128xf32>
    %93 = arith.mulf %77, %85 : vector<8x128xf32>
    %94 = arith.addf %92, %93 : vector<8x128xf32>
    %95 = math.tanh %94 : vector<8x128xf32>
    %96 = arith.mulf %91, %95 : vector<8x128xf32>
    %97 = vector.extract_strided_slice %10 {offsets = [24, 0], sizes = [8, 512], strides = [1, 1]} : vector<64x512xf32> to vector<8x512xf32>
    %cst_25 = arith.constant dense<0.000000e+00> : vector<8x512xf32>
    %98 = tpu.matmul %96, %5, %cst_25 {dimension_numbers = #tpu.dot_dimension_numbers<[1], [0], [0], [1], [0, 0, 1, 1], [], []>} : vector<8x128xf32>, vector<128x512xf32>, vector<8x512xf32> -> vector<8x512xf32>
    %99 = arith.addf %97, %98 : vector<8x512xf32>
    %100 = vector.extract_strided_slice %99 {offsets = [0, 0], sizes = [8, 128], strides = [1, 1]} : vector<8x512xf32> to vector<8x128xf32>
    %101 = arith.negf %100 : vector<8x128xf32>
    %102 = math.exp %101 : vector<8x128xf32>
    %cst_26 = arith.constant 1.000000e+00 : f32
    %103 = vector.broadcast %cst_26 : f32 to vector<8x128xf32>
    %104 = arith.addf %103, %102 : vector<8x128xf32>
    %105 = arith.divf %103, %104 : vector<8x128xf32>
    %106 = vector.extract_strided_slice %99 {offsets = [0, 128], sizes = [8, 128], strides = [1, 1]} : vector<8x512xf32> to vector<8x128xf32>
    %107 = arith.negf %106 : vector<8x128xf32>
    %108 = math.exp %107 : vector<8x128xf32>
    %cst_27 = arith.constant 1.000000e+00 : f32
    %109 = vector.broadcast %cst_27 : f32 to vector<8x128xf32>
    %110 = arith.addf %109, %108 : vector<8x128xf32>
    %111 = arith.divf %109, %110 : vector<8x128xf32>
    %112 = vector.extract_strided_slice %99 {offsets = [0, 256], sizes = [8, 128], strides = [1, 1]} : vector<8x512xf32> to vector<8x128xf32>
    %113 = math.tanh %112 : vector<8x128xf32>
    %114 = vector.extract_strided_slice %99 {offsets = [0, 384], sizes = [8, 128], strides = [1, 1]} : vector<8x512xf32> to vector<8x128xf32>
    %115 = arith.negf %114 : vector<8x128xf32>
    %116 = math.exp %115 : vector<8x128xf32>
    %cst_28 = arith.constant 1.000000e+00 : f32
    %117 = vector.broadcast %cst_28 : f32 to vector<8x128xf32>
    %118 = arith.addf %117, %116 : vector<8x128xf32>
    %119 = arith.divf %117, %118 : vector<8x128xf32>
    %120 = arith.mulf %111, %94 : vector<8x128xf32>
    %121 = arith.mulf %105, %113 : vector<8x128xf32>
    %122 = arith.addf %120, %121 : vector<8x128xf32>
    %123 = math.tanh %122 : vector<8x128xf32>
    %124 = arith.mulf %119, %123 : vector<8x128xf32>
    %125 = vector.extract_strided_slice %10 {offsets = [32, 0], sizes = [8, 512], strides = [1, 1]} : vector<64x512xf32> to vector<8x512xf32>
    %cst_29 = arith.constant dense<0.000000e+00> : vector<8x512xf32>
    %126 = tpu.matmul %124, %5, %cst_29 {dimension_numbers = #tpu.dot_dimension_numbers<[1], [0], [0], [1], [0, 0, 1, 1], [], []>} : vector<8x128xf32>, vector<128x512xf32>, vector<8x512xf32> -> vector<8x512xf32>
    %127 = arith.addf %125, %126 : vector<8x512xf32>
    %128 = vector.extract_strided_slice %127 {offsets = [0, 0], sizes = [8, 128], strides = [1, 1]} : vector<8x512xf32> to vector<8x128xf32>
    %129 = arith.negf %128 : vector<8x128xf32>
    %130 = math.exp %129 : vector<8x128xf32>
    %cst_30 = arith.constant 1.000000e+00 : f32
    %131 = vector.broadcast %cst_30 : f32 to vector<8x128xf32>
    %132 = arith.addf %131, %130 : vector<8x128xf32>
    %133 = arith.divf %131, %132 : vector<8x128xf32>
    %134 = vector.extract_strided_slice %127 {offsets = [0, 128], sizes = [8, 128], strides = [1, 1]} : vector<8x512xf32> to vector<8x128xf32>
    %135 = arith.negf %134 : vector<8x128xf32>
    %136 = math.exp %135 : vector<8x128xf32>
    %cst_31 = arith.constant 1.000000e+00 : f32
    %137 = vector.broadcast %cst_31 : f32 to vector<8x128xf32>
    %138 = arith.addf %137, %136 : vector<8x128xf32>
    %139 = arith.divf %137, %138 : vector<8x128xf32>
    %140 = vector.extract_strided_slice %127 {offsets = [0, 256], sizes = [8, 128], strides = [1, 1]} : vector<8x512xf32> to vector<8x128xf32>
    %141 = math.tanh %140 : vector<8x128xf32>
    %142 = vector.extract_strided_slice %127 {offsets = [0, 384], sizes = [8, 128], strides = [1, 1]} : vector<8x512xf32> to vector<8x128xf32>
    %143 = arith.negf %142 : vector<8x128xf32>
    %144 = math.exp %143 : vector<8x128xf32>
    %cst_32 = arith.constant 1.000000e+00 : f32
    %145 = vector.broadcast %cst_32 : f32 to vector<8x128xf32>
    %146 = arith.addf %145, %144 : vector<8x128xf32>
    %147 = arith.divf %145, %146 : vector<8x128xf32>
    %148 = arith.mulf %139, %122 : vector<8x128xf32>
    %149 = arith.mulf %133, %141 : vector<8x128xf32>
    %150 = arith.addf %148, %149 : vector<8x128xf32>
    %151 = math.tanh %150 : vector<8x128xf32>
    %152 = arith.mulf %147, %151 : vector<8x128xf32>
    %153 = vector.extract_strided_slice %10 {offsets = [40, 0], sizes = [8, 512], strides = [1, 1]} : vector<64x512xf32> to vector<8x512xf32>
    %cst_33 = arith.constant dense<0.000000e+00> : vector<8x512xf32>
    %154 = tpu.matmul %152, %5, %cst_33 {dimension_numbers = #tpu.dot_dimension_numbers<[1], [0], [0], [1], [0, 0, 1, 1], [], []>} : vector<8x128xf32>, vector<128x512xf32>, vector<8x512xf32> -> vector<8x512xf32>
    %155 = arith.addf %153, %154 : vector<8x512xf32>
    %156 = vector.extract_strided_slice %155 {offsets = [0, 0], sizes = [8, 128], strides = [1, 1]} : vector<8x512xf32> to vector<8x128xf32>
    %157 = arith.negf %156 : vector<8x128xf32>
    %158 = math.exp %157 : vector<8x128xf32>
    %cst_34 = arith.constant 1.000000e+00 : f32
    %159 = vector.broadcast %cst_34 : f32 to vector<8x128xf32>
    %160 = arith.addf %159, %158 : vector<8x128xf32>
    %161 = arith.divf %159, %160 : vector<8x128xf32>
    %162 = vector.extract_strided_slice %155 {offsets = [0, 128], sizes = [8, 128], strides = [1, 1]} : vector<8x512xf32> to vector<8x128xf32>
    %163 = arith.negf %162 : vector<8x128xf32>
    %164 = math.exp %163 : vector<8x128xf32>
    %cst_35 = arith.constant 1.000000e+00 : f32
    %165 = vector.broadcast %cst_35 : f32 to vector<8x128xf32>
    %166 = arith.addf %165, %164 : vector<8x128xf32>
    %167 = arith.divf %165, %166 : vector<8x128xf32>
    %168 = vector.extract_strided_slice %155 {offsets = [0, 256], sizes = [8, 128], strides = [1, 1]} : vector<8x512xf32> to vector<8x128xf32>
    %169 = math.tanh %168 : vector<8x128xf32>
    %170 = vector.extract_strided_slice %155 {offsets = [0, 384], sizes = [8, 128], strides = [1, 1]} : vector<8x512xf32> to vector<8x128xf32>
    %171 = arith.negf %170 : vector<8x128xf32>
    %172 = math.exp %171 : vector<8x128xf32>
    %cst_36 = arith.constant 1.000000e+00 : f32
    %173 = vector.broadcast %cst_36 : f32 to vector<8x128xf32>
    %174 = arith.addf %173, %172 : vector<8x128xf32>
    %175 = arith.divf %173, %174 : vector<8x128xf32>
    %176 = arith.mulf %167, %150 : vector<8x128xf32>
    %177 = arith.mulf %161, %169 : vector<8x128xf32>
    %178 = arith.addf %176, %177 : vector<8x128xf32>
    %179 = math.tanh %178 : vector<8x128xf32>
    %180 = arith.mulf %175, %179 : vector<8x128xf32>
    %181 = vector.extract_strided_slice %10 {offsets = [48, 0], sizes = [8, 512], strides = [1, 1]} : vector<64x512xf32> to vector<8x512xf32>
    %cst_37 = arith.constant dense<0.000000e+00> : vector<8x512xf32>
    %182 = tpu.matmul %180, %5, %cst_37 {dimension_numbers = #tpu.dot_dimension_numbers<[1], [0], [0], [1], [0, 0, 1, 1], [], []>} : vector<8x128xf32>, vector<128x512xf32>, vector<8x512xf32> -> vector<8x512xf32>
    %183 = arith.addf %181, %182 : vector<8x512xf32>
    %184 = vector.extract_strided_slice %183 {offsets = [0, 0], sizes = [8, 128], strides = [1, 1]} : vector<8x512xf32> to vector<8x128xf32>
    %185 = arith.negf %184 : vector<8x128xf32>
    %186 = math.exp %185 : vector<8x128xf32>
    %cst_38 = arith.constant 1.000000e+00 : f32
    %187 = vector.broadcast %cst_38 : f32 to vector<8x128xf32>
    %188 = arith.addf %187, %186 : vector<8x128xf32>
    %189 = arith.divf %187, %188 : vector<8x128xf32>
    %190 = vector.extract_strided_slice %183 {offsets = [0, 128], sizes = [8, 128], strides = [1, 1]} : vector<8x512xf32> to vector<8x128xf32>
    %191 = arith.negf %190 : vector<8x128xf32>
    %192 = math.exp %191 : vector<8x128xf32>
    %cst_39 = arith.constant 1.000000e+00 : f32
    %193 = vector.broadcast %cst_39 : f32 to vector<8x128xf32>
    %194 = arith.addf %193, %192 : vector<8x128xf32>
    %195 = arith.divf %193, %194 : vector<8x128xf32>
    %196 = vector.extract_strided_slice %183 {offsets = [0, 256], sizes = [8, 128], strides = [1, 1]} : vector<8x512xf32> to vector<8x128xf32>
    %197 = math.tanh %196 : vector<8x128xf32>
    %198 = vector.extract_strided_slice %183 {offsets = [0, 384], sizes = [8, 128], strides = [1, 1]} : vector<8x512xf32> to vector<8x128xf32>
    %199 = arith.negf %198 : vector<8x128xf32>
    %200 = math.exp %199 : vector<8x128xf32>
    %cst_40 = arith.constant 1.000000e+00 : f32
    %201 = vector.broadcast %cst_40 : f32 to vector<8x128xf32>
    %202 = arith.addf %201, %200 : vector<8x128xf32>
    %203 = arith.divf %201, %202 : vector<8x128xf32>
    %204 = arith.mulf %195, %178 : vector<8x128xf32>
    %205 = arith.mulf %189, %197 : vector<8x128xf32>
    %206 = arith.addf %204, %205 : vector<8x128xf32>
    %207 = math.tanh %206 : vector<8x128xf32>
    %208 = arith.mulf %203, %207 : vector<8x128xf32>
    %209 = vector.extract_strided_slice %10 {offsets = [56, 0], sizes = [8, 512], strides = [1, 1]} : vector<64x512xf32> to vector<8x512xf32>
    %cst_41 = arith.constant dense<0.000000e+00> : vector<8x512xf32>
    %210 = tpu.matmul %208, %5, %cst_41 {dimension_numbers = #tpu.dot_dimension_numbers<[1], [0], [0], [1], [0, 0, 1, 1], [], []>} : vector<8x128xf32>, vector<128x512xf32>, vector<8x512xf32> -> vector<8x512xf32>
    %211 = arith.addf %209, %210 : vector<8x512xf32>
    %212 = vector.extract_strided_slice %211 {offsets = [0, 0], sizes = [8, 128], strides = [1, 1]} : vector<8x512xf32> to vector<8x128xf32>
    %213 = arith.negf %212 : vector<8x128xf32>
    %214 = math.exp %213 : vector<8x128xf32>
    %cst_42 = arith.constant 1.000000e+00 : f32
    %215 = vector.broadcast %cst_42 : f32 to vector<8x128xf32>
    %216 = arith.addf %215, %214 : vector<8x128xf32>
    %217 = arith.divf %215, %216 : vector<8x128xf32>
    %218 = vector.extract_strided_slice %211 {offsets = [0, 128], sizes = [8, 128], strides = [1, 1]} : vector<8x512xf32> to vector<8x128xf32>
    %219 = arith.negf %218 : vector<8x128xf32>
    %220 = math.exp %219 : vector<8x128xf32>
    %cst_43 = arith.constant 1.000000e+00 : f32
    %221 = vector.broadcast %cst_43 : f32 to vector<8x128xf32>
    %222 = arith.addf %221, %220 : vector<8x128xf32>
    %223 = arith.divf %221, %222 : vector<8x128xf32>
    %224 = vector.extract_strided_slice %211 {offsets = [0, 256], sizes = [8, 128], strides = [1, 1]} : vector<8x512xf32> to vector<8x128xf32>
    %225 = math.tanh %224 : vector<8x128xf32>
    %226 = vector.extract_strided_slice %211 {offsets = [0, 384], sizes = [8, 128], strides = [1, 1]} : vector<8x512xf32> to vector<8x128xf32>
    %227 = arith.negf %226 : vector<8x128xf32>
    %228 = math.exp %227 : vector<8x128xf32>
    %cst_44 = arith.constant 1.000000e+00 : f32
    %229 = vector.broadcast %cst_44 : f32 to vector<8x128xf32>
    %230 = arith.addf %229, %228 : vector<8x128xf32>
    %231 = arith.divf %229, %230 : vector<8x128xf32>
    %232 = arith.mulf %223, %206 : vector<8x128xf32>
    %233 = arith.mulf %217, %225 : vector<8x128xf32>
    %234 = arith.addf %232, %233 : vector<8x128xf32>
    %235 = math.tanh %234 : vector<8x128xf32>
    %236 = arith.mulf %231, %235 : vector<8x128xf32>
    %c0_45 = arith.constant 0 : index
    %c0_46 = arith.constant 0 : index
    %c0_47 = arith.constant 0 : index
    %237 = vector.load %arg5[%c0_45, %c0_46, %c0_47] : memref<1x128x64xf32, #tpu.memory_space<vmem>>, vector<1x128x64xf32>
    %238 = vector.shape_cast %237 : vector<1x128x64xf32> to vector<128x64xf32>
    %cst_48 = arith.constant dense<0.000000e+00> : vector<8x64xf32>
    %239 = tpu.matmul %236, %238, %cst_48 {dimension_numbers = #tpu.dot_dimension_numbers<[1], [0], [0], [1], [0, 0, 1, 1], [], []>} : vector<8x128xf32>, vector<128x64xf32>, vector<8x64xf32> -> vector<8x64xf32>
    %c0_49 = arith.constant 0 : index
    %c0_50 = arith.constant 0 : index
    %c0_51 = arith.constant 0 : index
    %240 = vector.load %arg6[%c0_49, %c0_50, %c0_51] : memref<1x1x64xf32, #tpu.memory_space<vmem>>, vector<1x1x64xf32>
    %241 = vector.shape_cast %240 : vector<1x1x64xf32> to vector<1x64xf32>
    %242 = vector.broadcast %241 : vector<1x64xf32> to vector<8x64xf32>
    %243 = arith.addf %239, %242 : vector<8x64xf32>
    %cst_52 = arith.constant 0.000000e+00 : f32
    %244 = vector.broadcast %cst_52 : f32 to vector<8x64xf32>
    %245 = arith.cmpf ogt, %243, %244 : vector<8x64xf32>
    %cst_53 = arith.constant 0.00999999977 : f32
    %246 = vector.broadcast %cst_53 : f32 to vector<8x64xf32>
    %247 = arith.mulf %246, %243 : vector<8x64xf32>
    %248 = arith.select %245, %243, %247 : vector<8x64xi1>, vector<8x64xf32>
    %c0_54 = arith.constant 0 : index
    %c0_55 = arith.constant 0 : index
    %c0_56 = arith.constant 0 : index
    %249 = vector.load %arg7[%c0_54, %c0_55, %c0_56] : memref<1x1x64xf32, #tpu.memory_space<vmem>>, vector<1x1x64xf32>
    %250 = vector.shape_cast %249 : vector<1x1x64xf32> to vector<1x64xf32>
    %251 = vector.broadcast %250 : vector<1x64xf32> to vector<8x64xf32>
    %252 = arith.mulf %248, %251 : vector<8x64xf32>
    %c0_57 = arith.constant 0 : index
    %c0_58 = arith.constant 0 : index
    %c0_59 = arith.constant 0 : index
    %253 = vector.load %arg8[%c0_57, %c0_58, %c0_59] : memref<1x1x64xf32, #tpu.memory_space<vmem>>, vector<1x1x64xf32>
    %254 = vector.shape_cast %253 : vector<1x1x64xf32> to vector<1x64xf32>
    %255 = vector.broadcast %254 : vector<1x64xf32> to vector<8x64xf32>
    %256 = arith.addf %252, %255 : vector<8x64xf32>
    %c0_60 = arith.constant 0 : index
    %c0_61 = arith.constant 0 : index
    %c0_62 = arith.constant 0 : index
    %257 = vector.load %arg9[%c0_60, %c0_61, %c0_62] : memref<1x64x32xf32, #tpu.memory_space<vmem>>, vector<1x64x32xf32>
    %258 = vector.shape_cast %257 : vector<1x64x32xf32> to vector<64x32xf32>
    %cst_63 = arith.constant dense<0.000000e+00> : vector<8x32xf32>
    %259 = tpu.matmul %256, %258, %cst_63 {dimension_numbers = #tpu.dot_dimension_numbers<[1], [0], [0], [1], [0, 0, 1, 1], [], []>} : vector<8x64xf32>, vector<64x32xf32>, vector<8x32xf32> -> vector<8x32xf32>
    %c0_64 = arith.constant 0 : index
    %c0_65 = arith.constant 0 : index
    %c0_66 = arith.constant 0 : index
    %260 = vector.load %arg10[%c0_64, %c0_65, %c0_66] : memref<1x1x32xf32, #tpu.memory_space<vmem>>, vector<1x1x32xf32>
    %261 = vector.shape_cast %260 : vector<1x1x32xf32> to vector<1x32xf32>
    %262 = vector.broadcast %261 : vector<1x32xf32> to vector<8x32xf32>
    %263 = arith.addf %259, %262 : vector<8x32xf32>
    %cst_67 = arith.constant 0.000000e+00 : f32
    %264 = vector.broadcast %cst_67 : f32 to vector<8x32xf32>
    %265 = arith.cmpf ogt, %263, %264 : vector<8x32xf32>
    %cst_68 = arith.constant 0.00999999977 : f32
    %266 = vector.broadcast %cst_68 : f32 to vector<8x32xf32>
    %267 = arith.mulf %266, %263 : vector<8x32xf32>
    %268 = arith.select %265, %263, %267 : vector<8x32xi1>, vector<8x32xf32>
    %c0_69 = arith.constant 0 : index
    %c0_70 = arith.constant 0 : index
    %c0_71 = arith.constant 0 : index
    %269 = vector.load %arg11[%c0_69, %c0_70, %c0_71] : memref<1x32x8xf32, #tpu.memory_space<vmem>>, vector<1x32x8xf32>
    %270 = vector.shape_cast %269 : vector<1x32x8xf32> to vector<32x8xf32>
    %cst_72 = arith.constant dense<0.000000e+00> : vector<8x8xf32>
    %271 = tpu.matmul %268, %270, %cst_72 {dimension_numbers = #tpu.dot_dimension_numbers<[1], [0], [0], [1], [0, 0, 1, 1], [], []>} : vector<8x32xf32>, vector<32x8xf32>, vector<8x8xf32> -> vector<8x8xf32>
    %c0_73 = arith.constant 0 : index
    %c0_74 = arith.constant 0 : index
    %c0_75 = arith.constant 0 : index
    %272 = vector.load %arg12[%c0_73, %c0_74, %c0_75] : memref<1x1x8xf32, #tpu.memory_space<vmem>>, vector<1x1x8xf32>
    %273 = vector.shape_cast %272 : vector<1x1x8xf32> to vector<1x8xf32>
    %274 = vector.broadcast %273 : vector<1x8xf32> to vector<8x8xf32>
    %275 = arith.addf %271, %274 : vector<8x8xf32>
    %276 = vector.extract_strided_slice %275 {offsets = [0, 0], sizes = [2, 8], strides = [1, 1]} : vector<8x8xf32> to vector<2x8xf32>
    %c0_76 = arith.constant 0 : index
    %c0_77 = arith.constant 0 : index
    %c0_78 = arith.constant 0 : index
    %277 = vector.load %arg13[%c0_76, %c0_77, %c0_78] : memref<1x2x8xf32, #tpu.memory_space<vmem>>, vector<1x2x8xf32>
    %278 = vector.shape_cast %277 : vector<1x2x8xf32> to vector<2x8xf32>
    %279 = vector.shape_cast %276 : vector<2x8xf32> to vector<1x2x8xf32>
    tpu.vector_store %arg13[%c0_76, %c0_77, %c0_78], %279 {strides = array<i32>} : memref<1x2x8xf32, #tpu.memory_space<vmem>>, vector<1x2x8xf32>,
    return
  }
  func.func @transform_0(%arg0: i32) -> (i32, i32, i32) {
    %c0_i32 = arith.constant 0 : i32
    %c0_i32_0 = arith.constant 0 : i32
    %c0_i32_1 = arith.constant 0 : i32
    return %arg0, %c0_i32, %c0_i32_0 : i32, i32, i32
  }
  func.func @transform_1(%arg0: i32) -> (i32, i32, i32) {
    %c0_i32 = arith.constant 0 : i32
    %c0_i32_0 = arith.constant 0 : i32
    %c0_i32_1 = arith.constant 0 : i32
    return %arg0, %c0_i32, %c0_i32_0 : i32, i32, i32
  }
  func.func @transform_2(%arg0: i32) -> (i32, i32, i32) {
    %c0_i32 = arith.constant 0 : i32
    %c0_i32_0 = arith.constant 0 : i32
    %c0_i32_1 = arith.constant 0 : i32
    return %arg0, %c0_i32, %c0_i32_0 : i32, i32, i32
  }
  func.func @transform_3(%arg0: i32) -> (i32, i32, i32) {
    %c0_i32 = arith.constant 0 : i32
    %c0_i32_0 = arith.constant 0 : i32
    %c0_i32_1 = arith.constant 0 : i32
    return %arg0, %c0_i32, %c0_i32_0 : i32, i32, i32
  }
  func.func @transform_4(%arg0: i32) -> (i32, i32, i32) {
    %c0_i32 = arith.constant 0 : i32
    %c0_i32_0 = arith.constant 0 : i32
    %c0_i32_1 = arith.constant 0 : i32
    return %arg0, %c0_i32, %c0_i32_0 : i32, i32, i32
  }
  func.func @transform_5(%arg0: i32) -> (i32, i32, i32) {
    %c0_i32 = arith.constant 0 : i32
    %c0_i32_0 = arith.constant 0 : i32
    %c0_i32_1 = arith.constant 0 : i32
    return %arg0, %c0_i32, %c0_i32_0 : i32, i32, i32
  }
  func.func @transform_6(%arg0: i32) -> (i32, i32, i32) {
    %c0_i32 = arith.constant 0 : i32
    %c0_i32_0 = arith.constant 0 : i32
    %c0_i32_1 = arith.constant 0 : i32
    return %arg0, %c0_i32, %c0_i32_0 : i32, i32, i32
  }
  func.func @transform_7(%arg0: i32) -> (i32, i32, i32) {
    %c0_i32 = arith.constant 0 : i32
    %c0_i32_0 = arith.constant 0 : i32
    %c0_i32_1 = arith.constant 0 : i32
    return %arg0, %c0_i32, %c0_i32_0 : i32, i32, i32
  }
  func.func @transform_8(%arg0: i32) -> (i32, i32, i32) {
    %c0_i32 = arith.constant 0 : i32
    %c0_i32_0 = arith.constant 0 : i32
    %c0_i32_1 = arith.constant 0 : i32
    return %arg0, %c0_i32, %c0_i32_0 : i32, i32, i32
  }
  func.func @transform_9(%arg0: i32) -> (i32, i32, i32) {
    %c0_i32 = arith.constant 0 : i32
    %c0_i32_0 = arith.constant 0 : i32
    %c0_i32_1 = arith.constant 0 : i32
    return %arg0, %c0_i32, %c0_i32_0 : i32, i32, i32
  }
  func.func @transform_10(%arg0: i32) -> (i32, i32, i32) {
    %c0_i32 = arith.constant 0 : i32
    %c0_i32_0 = arith.constant 0 : i32
    %c0_i32_1 = arith.constant 0 : i32
    return %arg0, %c0_i32, %c0_i32_0 : i32, i32, i32
  }
  func.func @transform_11(%arg0: i32) -> (i32, i32, i32) {
    %c0_i32 = arith.constant 0 : i32
    %c0_i32_0 = arith.constant 0 : i32
    %c0_i32_1 = arith.constant 0 : i32
    return %arg0, %c0_i32, %c0_i32_0 : i32, i32, i32
  }
  func.func @transform_12(%arg0: i32) -> (i32, i32, i32) {
    %c0_i32 = arith.constant 0 : i32
    %c0_i32_0 = arith.constant 0 : i32
    %c0_i32_1 = arith.constant 0 : i32
    return %arg0, %c0_i32, %c0_i32_0 : i32, i32, i32
  }
}

</mosaic_0001>

<bundles_post_ra>
// kernel: rnn_forward.1
= control target key start
LH: loop header
LB: loop body
LE: loop exit
PB: predicated region body
PF: predicated region fallthrough
CT: control target
= control target key end

     0   :  { %17 = vsyncpa [#allocation3], 0  ;;  %s4634_s0 = inlined_call_operand.vmem [shape: f32[2,64,24], index: 0, kind: input, shape index: {}]   ;;  %s4635_s1 = inlined_call_operand.vmem [shape: f32[2,24,512], index: 1, kind: input, shape index: {}]   ;;  %s4636_s2 = inlined_call_operand.hbm [shape: f32[2,128,512], index: 2, kind: input, shape index: {}]   ;;  %s4637_s3 = inlined_call_operand.vmem [shape: f32[2,1,512], index: 3, kind: input, shape index: {}]   ;;  %s4638_s4 = inlined_call_operand.vmem [shape: f32[2,128,64], index: 4, kind: input, shape index: {}]   ;;  %s4639_s5 = inlined_call_operand.vmem [shape: f32[2,1,64], index: 5, kind: input, shape index: {}]   ;;  %s4640_s6 = inlined_call_operand.vmem [shape: f32[2,1,64], index: 6, kind: input, shape index: {}]   ;;  %s4641_s7 = inlined_call_operand.vmem [shape: f32[2,1,64], index: 7, kind: input, shape index: {}]   ;;  %s4642_s8 = inlined_call_operand.vmem [shape: f32[2,64,32], index: 8, kind: input, shape index: {}]   ;;  %s4643_s9 = inlined_call_operand.vmem [shape: f32[2,1,32], index: 9, kind: input, shape index: {}]   ;;  %s4644_s10 = inlined_call_operand.vmem [shape: f32[2,32,8], index: 10, kind: input, shape index: {}]   ;;  %s4645_s11 = inlined_call_operand.vmem [shape: f32[2,1,8], index: 11, kind: input, shape index: {}]   ;;  %s4646_s12 = inlined_call_operand.vmem [shape: f32[2,2,8], index: 12, kind: output, shape index: {}]  }
   0x1   :  { %19 = vsyncpa [#allocation3 + $0x1], 0  ;;  %s3914_s21 = smov 0   ;;  %s3916_s22 = smov 0  }
   0x2   :  { %s3918_s23 = smov 0   ;;  %s3920_s24 = smov 0  }
   0x3 LB: > { %s3933_s25 = sadd.s32 4294967295, %s3841_s24   ;;  %s3936_s26 = sadd.s32 1, %s3841_s24   ;;  %s3841_s24 = sphi %s3920_s24, %s4653_s24   ;;  %s3837_s23 = sphi %s3918_s23, %s4652_s23   ;;  %s3833_s22 = sphi %s3916_s22, %s4651_s22   ;;  %s3829_s21 = sphi %s3914_s21, %s4650_s21  }
   0x4   : > { %s81_s27 = ssub.s32 %s3841_s24, %s3936_s26  ;;  %s84_s28 = sadd.s32 1, %s3837_s23 }
   0x5   : > { %p82_p0 = scmp.eq.s32.totalorder %s81_s27, 0  ;;  %p91_p1 = scmp.ne.s32.totalorder %s3837_s23, %s3833_s22 }
   0x6   : > { %p92_p2 = scmp.eq.s32.totalorder %s3841_s24, 0  ;;  %p97_p3 = scmp.ne.s32.totalorder %s3833_s22, %s3829_s21 }
   0x7   : > { %s3946_s29 = scalar_select %p82_p0, %s3837_s23, %s84_s28  }
   0x8   : > { %p93_p4 = por %p92_p2, %p91_p1  ;;  %p98_p5 = scmp.eq.s32.totalorder %s3933_s25, 0 }
   0x9   : > { %p3611_p6 = scmp.lt.s32.totalorder %s3841_s24, 2  ;;  %s397_s13 = sand.u32 1, %s3837_s23  }
   0xa   : > { %p3950_p7 = por %p98_p5, %p97_p3  ;;  %s2812_s14 = sshll.u32 %s397_s13, 9 }
   0xb   : > { %s2877_s15 = sshll.u32 %s3841_s24, 13  ;;  %s401_s19 = scalar_lea.vmem [#allocation2], %s2812_s14 }
   0xc   : > { %s3959_s18 = scalar_lea.hbm %s4636_s2, %s2877_s15  ;;  %s408_s20 = sshll.u32 %s401_s19, 4  ;;  %s3961_s20 = int_to_ptr.vmem [resolvable:$true] %s408_s20 }
   0xd   : > { %p3963_p8 = pnand %p3611_p6, %p93_p4  ;;  %s3968_s27 = scalar_lea.sflag [#allocation3], %s397_s13 }
   0xe   : > { %s3777_s28 = scalar_lea.hbm %s3959_s18, 8192  ;;  %s3782_s16 = scalar_lea.hbm %s4636_s2, 16384 }
   0xf   : > { %p3778_p10 = scmp.ne.s32.totalorder %s3959_s18, %s3777_s28  ;;  %p3779_p11 = pneg %p3963_p8 }
  0x10   : > { %p3783_p0 = scmp.lt.u32.totalorder %s3959_s18, %s4636_s2  ;;  %p3784_p1 = scmp.lt.u32.totalorder %s3782_s16, %s3777_s28 }
  0x11   : > { %p3780_p12 = pnand %p3779_p11, %p3778_p10  ;;  %p3786_p3 = scmp.lt.u32.totalorder %s3777_s28, %s3959_s18 }
  0x12   : > { %p3785_p2 = por %p3784_p1, %p3783_p0 }
  0x13   : > { %p3781_p13 = pneg %p3780_p12 }
  0x14   : > { %p3787_p4 = por %p3786_p3, %p3785_p2 }
  0x16   : > { %p3788_p5 = pnand %p3787_p4, %p3781_p13 }
  0x18   : > { %3791 = shalt.err (!%p3788_p5)
}
  0x19   : > { %s3792_s13 = scalar_lea.vmem %s3961_s20, 8192  ;;  %s3843_s14 = smov [#allocation2]  }
  0x1a   : > { %p3793_p6 = scmp.ne.s32.totalorder %s3961_s20, %s3792_s13  ;;  %s3797_s15 = sshll.u32 %s3843_s14, 4  ;;  %s3798_s15 = int_to_ptr.vmem [resolvable:$false] %s3797_s15 }
  0x1b   : > { %s3799_s17 = scalar_lea.vmem %s3798_s15, 16384  ;;  %p3800_p9 = scmp.lt.s32.totalorder %s3961_s20, %s3798_s15 }
  0x1c   : > { %p3795_p10 = pnand %p3793_p6, %p3779_p11  ;;  %p3801_p0 = scmp.lt.s32.totalorder %s3799_s17, %s3792_s13 }
  0x1e   : > { %p3796_p12 = pneg %p3795_p10  ;;  %p3802_p1 = por %p3801_p0, %p3800_p9 }
  0x20   : > { %p3803_p2 = pnand %p3802_p1, %p3796_p12 }
  0x22   : > { %3806 = shalt.err (!%p3803_p2)
}
  0x23   : > { %s3844_s28 = smov 512   ;;  %s3845_s16 = smov 32  }
  0x24   : > { %3610 = dma.hbm_to_vmem [thread:$0]  (!%p3963_p8), %s3959_s18, 8192, %s3961_s20, %s3968_s27, %s3844_s28, %s3844_s28, %s3845_s16  }
  0x25   : > { %p477_p11 = scmp.lt.s32.totalorder %s3841_s24, 3  ;;  %p4649_p13 = scmp.ge.s32.totalorder %s3841_s24, 1 }
  0x27   : > { %p478_p3 = pnand %p4649_p13, %p477_p11 }
  0x28   : > { %s483_s19 = sand.u32 (!%p478_p3), 1, %s3833_s22  }
  0x29   : > { %481 = sbr.rel (%p478_p3) target bundleno = 2815 (0xaff), region = 68  ;;  %s2816_s13 = sshll.u32 (!%p478_p3), %s483_s19, 9 }
  0x2a   : > { %s484_s14 = scalar_lea.sflag (!%p478_p3), [#allocation3], %s483_s19  ;;  %s4000_s15 = scalar_lea.vmem (!%p478_p3), [#allocation2], %s2816_s13 }
  0x30   : > { %3824 = dma.done.wait (%p3950_p7), %s484_s14, 8192  }
  0x31   : > { %3826 = vsyncadd (%p3950_p7), %s484_s14, 4294959104  ;;  %p571_p9 = scmp.lt.s32.totalorder %s3933_s25, 1  ;;  %v3846_v0 = vmov 0.0   ;;  %v640_v18 = vld [vmem:[%s4000_s15 + $0x8] sm:$0xff]  ;;  %v642_v20 = vld [vmem:[%s4000_s15 + $0x18] sm:$0xff]  ;;  %vm725_vm0 = vcmask 195584  }
  0x32   : > { %814 = vmatprep.mubr.f32.mxu0 %v3846_v0  ;;  %927 = vmatprep.mubr.f32.mxu1 %v3846_v0  ;;  %v644_v19 = vld [vmem:[%s4000_s15 + $0x28] sm:$0xff]  ;;  %v646_v21 = vld [vmem:[%s4000_s15 + $0x38] sm:$0xff]  ;;  %v639_v22 = vld [vmem:[%s4000_s15] sm:$0xff]  ;;  %vm3848_vm1 = vmmov 0   ;;  %vm2463_vm3 = vcmask 523264   ;;  %vm2551_vm5 = vcmask 261120  }
  0x33   : > { %s4655_s25 = smov (!%p571_p9, %s3933_s25), 1  ;;  %v4030_v23 = vpack.c.bf16 %v644_v19, %v640_v18  ;;  %v643_v24 = vld [vmem:[%s4000_s15 + $0x20] sm:$0xff]  ;;  %v641_v25 = vld [vmem:[%s4000_s15 + $0x10] sm:$0xff]  ;;  %v4035_v27 = vpack.c.bf16 %v646_v21, %v642_v20  ;;  %v648_v29 = vld [vmem:[%s4000_s15 + $0x48] sm:$0xff]  ;;  %vm2625_vm6 = vcmask 58368  }
  0x34   : > { %s3604_s24 = smul.u32 96, %s4655_s25  ;;  %s2878_s18 = sshll.u32 %s4655_s25, 6  ;;  %v645_v26 = vld [vmem:[%s4000_s15 + $0x30] sm:$0xff]  ;;  %v4037_v28 = vpack.c.bf16 %v643_v24, %v639_v22  ;;  %v652_v30 = vld [vmem:[%s4000_s15 + $0x68] sm:$0xff]  ;;  %v650_v32 = vld [vmem:[%s4000_s15 + $0x58] sm:$0xff] }
  0x35   : > { %s4022_s28 = scalar_lea.vmem %s4634_s0, %s2878_s18  ;;  %v4041_v31 = vpack.c.bf16 %v645_v26, %v641_v25  ;;  %v654_v33 = vld [vmem:[%s4000_s15 + $0x78] sm:$0xff]  ;;  %v647_v34 = vld [vmem:[%s4000_s15 + $0x40] sm:$0xff]  ;;  %v649_v36 = vld [vmem:[%s4000_s15 + $0x50] sm:$0xff]  ;;  %v4053_v39 = vpack.c.bf16 %v652_v30, %v648_v29  ;;  %s2820_s16 = sshll.u32 %s4655_s25, 2 }
  0x36   : > { %s580_s30 = scalar_lea.vmem %s4635_s1, %s3604_s24  ;;  %v619_v17 = vld [vmem:[%s4022_s28] sm:$0xff]  ;;  %v653_v37 = vld [vmem:[%s4000_s15 + $0x70] sm:$0xff]  ;;  %v620_v38 = vld [vmem:[%s4022_s28 + $0x8] sm:$0xff]  ;;  %v4057_v40 = vpack.c.bf16 %v654_v33, %v650_v32  ;;  %s584_s14 = scalar_lea.vmem %s4637_s3, %s2820_s16 }
  0x37   : > { %v628_v1 = vld [vmem:[%s580_s30 + $0x8] sm:$0xff]  ;;  %v630_v3 = vld [vmem:[%s580_s30 + $0x18] sm:$0xff]  ;;  %v627_v6 = vld [vmem:[%s580_s30] sm:$0xff]  ;;  %v4066_v45 = vpack.c.bf16 %v653_v37, %v649_v36  ;;  %s4571_s17 = scalar_lea.vmem %s4642_s8, %s2878_s18  ;;  %s592_s16 = scalar_lea.vmem %s4639_s5, %s4655_s25 }
  0x38   : > { %v632_v2 = vld [vmem:[%s580_s30 + $0x28] sm:$0xff]  ;;  %v634_v5 = vld [vmem:[%s580_s30 + $0x38] sm:$0xff]  ;;  %v631_v7 = vld [vmem:[%s580_s30 + $0x20] sm:$0xff]  ;;  %s2881_s19 = sshll.u32 %s4655_s25, 5 }
  0x39   : > { %v2978_v4 = vpack.c.bf16 %v632_v2, %v628_v1  ;;  %v2982_v8 = vpack.c.bf16 %v634_v5, %v630_v3  ;;  %v2980_v9 = vpack.c.bf16 %v631_v7, %v627_v6  ;;  %v629_v10 = vld [vmem:[%s580_s30 + $0x10] sm:$0xff]  ;;  %v636_v12 = vld [vmem:[%s580_s30 + $0x48] sm:$0xff]  ;;  %v638_v14 = vld [vmem:[%s580_s30 + $0x58] sm:$0xff] }
  0x3a   : > { %v633_v11 = vld [vmem:[%s580_s30 + $0x30] sm:$0xff]  ;;  %v635_v15 = vld [vmem:[%s580_s30 + $0x40] sm:$0xff]  ;;  %v656_v42 = vld [vmem:[%s4000_s15 + $0x88] sm:$0xff] }
  0x3b   : > { %2979 = vmatprep.subr.bf16.mxu0 %v2978_v4  ;;  %v2984_v13 = vpack.c.bf16 %v633_v11, %v629_v10  ;;  %2983 = vmatprep.subr.bf16.mxu1 %v2982_v8  ;;  %v637_v16 = vld [vmem:[%s580_s30 + $0x50] sm:$0xff]  ;;  %v651_v35 = vld [vmem:[%s4000_s15 + $0x60] sm:$0xff]  ;;  %v660_v43 = vld [vmem:[%s4000_s15 + $0xa8] sm:$0xff] }
  0x3c   : > { %2981 = vmatpush1.bf16.msra.mxu0 %v2980_v9  ;;  %v4059_v41 = vpack.c.bf16 %v651_v35, %v647_v34  ;;  %v658_v44 = vld [vmem:[%s4000_s15 + $0x98] sm:$0xff]  ;;  %v655_v47 = vld [vmem:[%s4000_s15 + $0x80] sm:$0xff]  ;;  %v657_v49 = vld [vmem:[%s4000_s15 + $0x90] sm:$0xff]  ;;  %v4078_v52 = vpack.c.bf16 %v660_v43, %v656_v42 }
  0x3d   : > { %2985 = vmatpush1.bf16.msra.mxu1 %v2984_v13  ;;  %754 = vmatprep.subr.mxu0 %v636_v12  ;;  %v662_v46 = vld [vmem:[%s4000_s15 + $0xb8] sm:$0xff]  ;;  %v659_v48 = vld [vmem:[%s4000_s15 + $0xa0] sm:$0xff]  ;;  %v661_v50 = vld [vmem:[%s4000_s15 + $0xb0] sm:$0xff] }
  0x3e   : > { %867 = vmatprep.subr.mxu1 %v638_v14  ;;  %v621_v51 = vld [vmem:[%s4022_s28 + $0x10] sm:$0xff]  ;;  %v4082_v53 = vpack.c.bf16 %v662_v46, %v658_v44  ;;  %v4084_v54 = vpack.c.bf16 %v659_v48, %v655_v47  ;;  %v664_v55 = vld [vmem:[%s4000_s15 + $0xc8] sm:$0xff]  ;;  %v666_v57 = vld [vmem:[%s4000_s15 + $0xd8] sm:$0xff]  ;;  %v4091_v58 = vpack.c.bf16 %v661_v50, %v657_v49 }
  0x3f   : > { %v668_v56 = vld [vmem:[%s4000_s15 + $0xe8] sm:$0xff]  ;;  %v670_v59 = vld [vmem:[%s4000_s15 + $0xf8] sm:$0xff]  ;;  %v663_v60 = vld [vmem:[%s4000_s15 + $0xc0] sm:$0xff] }
  0x40   : > { %755 = vmatpush1.msra.mxu0 %v635_v15  ;;  %v667_v61 = vld [vmem:[%s4000_s15 + $0xe0] sm:$0xff]  ;;  %v665_v62 = vld [vmem:[%s4000_s15 + $0xd0] sm:$0xff]  ;;  %v622_v1 = vld [vmem:[%s4022_s28 + $0x18] sm:$0xff]  ;;  %v4103_v2 = vpack.c.bf16 %v668_v56, %v664_v55  ;;  %v4107_v3 = vpack.c.bf16 %v670_v59, %v666_v57 }
  0x41   : > { %868 = vmatpush1.msra.mxu1 %v637_v16  ;;  %2828 = vmatmul.mubr.msk.f32.vlgmr.msra.gmra.mrb[0].mxu0 %vm725_vm0, %v619_v17  ;;  %v669_v63 = vld [vmem:[%s4000_s15 + $0xf0] sm:$0xff]  ;;  %v4109_v4 = vpack.c.bf16 %v667_v61, %v663_v60  ;;  %v672_v5 = vld [vmem:[%s4000_s15 + $0x108] sm:$0xff]  ;;  %v674_v7 = vld [vmem:[%s4000_s15 + $0x118] sm:$0xff] }
  0x42   : > { %2836 = vmatmul.mubr.msk.f32.vlgmr.msra.gmra.mrb[0].mxu1 %vm725_vm0, %v619_v17  ;;  %2987 = vmatprep.subr.bf16.mxu0 %v4030_v23  ;;  %v676_v6 = vld [vmem:[%s4000_s15 + $0x128] sm:$0xff]  ;;  %v4116_v8 = vpack.c.bf16 %v669_v63, %v665_v62  ;;  %v678_v9 = vld [vmem:[%s4000_s15 + $0x138] sm:$0xff]  ;;  %v671_v10 = vld [vmem:[%s4000_s15 + $0x100] sm:$0xff] }
  0x43   : > { %3019 = vmatprep.subr.bf16.mxu1 %v4035_v27  ;;  %2989 = vmatpush1.bf16.msra.mxu0 %v4037_v28  ;;  %v675_v11 = vld [vmem:[%s4000_s15 + $0x120] sm:$0xff]  ;;  %v673_v12 = vld [vmem:[%s4000_s15 + $0x110] sm:$0xff]  ;;  %v4128_v15 = vpack.c.bf16 %v676_v6, %v672_v5  ;;  %v4132_v16 = vpack.c.bf16 %v678_v9, %v674_v7  ;;  %v680_v18 = vld [vmem:[%s4000_s15 + $0x148] sm:$0xff] }
  0x44   : > { %3021 = vmatpush1.bf16.msra.mxu1 %v4041_v31  ;;  %820 = vmatprep.mubr.f32.mxu0 %v3846_v0  ;;  %v677_v13 = vld [vmem:[%s4000_s15 + $0x130] sm:$0xff]  ;;  %v623_v14 = vld [vmem:[%s4022_s28 + $0x20] sm:$0xff]  ;;  %v4134_v17 = vpack.c.bf16 %v675_v11, %v671_v10  ;;  %v684_v19 = vld [vmem:[%s4000_s15 + $0x168] sm:$0xff]  ;;  %v705_v11 = vlaneseq }
  0x45   : > { %933 = vmatprep.mubr.f32.mxu1 %v3846_v0  ;;  %2829 = vmatmul.mubr.msk.f32.gmra.mrb[2].mxu0 %vm725_vm0, %v620_v38  ;;  %v682_v20 = vld [vmem:[%s4000_s15 + $0x158] sm:$0xff]  ;;  %v4141_v21 = vpack.c.bf16 %v677_v13, %v673_v12  ;;  %v679_v24 = vld [vmem:[%s4000_s15 + $0x140] sm:$0xff]  ;;  %v681_v26 = vld [vmem:[%s4000_s15 + $0x150] sm:$0xff]  ;;  %v4153_v32 = vpack.c.bf16 %v684_v19, %v680_v18 }
  0x46   : > { %2837 = vmatmul.mubr.msk.f32.gmra.mrb[2].mxu1 %vm725_vm0, %v620_v38  ;;  %2991 = vmatprep.subr.bf16.mxu0 %v4053_v39  ;;  %v686_v22 = vld [vmem:[%s4000_s15 + $0x178] sm:$0xff]  ;;  %v683_v25 = vld [vmem:[%s4000_s15 + $0x160] sm:$0xff]  ;;  %v685_v29 = vld [vmem:[%s4000_s15 + $0x170] sm:$0xff]  ;;  %v706_v12 = vshrl.u32 %v705_v11, 7 }
  0x47   : > { %3023 = vmatprep.subr.bf16.mxu1 %v4057_v40  ;;  %2993 = vmatpush1.bf16.msra.mxu0 %v4059_v41  ;;  %v624_v30 = vld [vmem:[%s4022_s28 + $0x28] sm:$0xff]  ;;  %v4157_v33 = vpack.c.bf16 %v686_v22, %v682_v20  ;;  %v4159_v34 = vpack.c.bf16 %v683_v25, %v679_v24  ;;  %v690_v37 = vld [vmem:[%s4000_s15 + $0x198] sm:$0xff]  ;;  %v4166_v38 = vpack.c.bf16 %v685_v29, %v681_v26  ;;  %v687_v43 = vld [vmem:[%s4000_s15 + $0x180] sm:$0xff] }
  0x48   : > { %3025 = vmatpush1.bf16.msra.mxu1 %v4066_v45  ;;  %826 = vmatprep.mubr.f32.mxu0 %v3846_v0  ;;  %v688_v35 = vld [vmem:[%s4000_s15 + $0x188] sm:$0xff]  ;;  %v694_v42 = vld [vmem:[%s4000_s15 + $0x1b8] sm:$0xff]  ;;  %v691_v44 = vld [vmem:[%s4000_s15 + $0x1a0] sm:$0xff]  ;;  %v707_v13 = vsub.s32 0, %v706_v12  ;;  %v711_v18 = vsub.s32 1, %v706_v12  ;;  %v719_v24 = vsub.s32 3, %v706_v12 }
  0x49   : > { %939 = vmatprep.mubr.f32.mxu1 %v3846_v0  ;;  %2830 = vmatmul.mubr.msk.f32.gmra.mrb[4].mxu0 %vm725_vm0, %v621_v51  ;;  %v692_v36 = vld [vmem:[%s4000_s15 + $0x1a8] sm:$0xff]  ;;  %v689_v46 = vld [vmem:[%s4000_s15 + $0x190] sm:$0xff]  ;;  %v4182_v50 = vpack.c.bf16 %v694_v42, %v690_v37  ;;  %v698_v57 = vld [vmem:[%s4000_s15 + $0x1d8] sm:$0xff] }
  0x4a   : > { %2838 = vmatmul.mubr.msk.f32.gmra.mrb[4].mxu1 %vm725_vm0, %v621_v51  ;;  %2995 = vmatprep.subr.bf16.mxu0 %v4078_v52  ;;  %v693_v47 = vld [vmem:[%s4000_s15 + $0x1b0] sm:$0xff]  ;;  %v4178_v49 = vpack.c.bf16 %v692_v36, %v688_v35  ;;  %v4184_v51 = vpack.c.bf16 %v691_v44, %v687_v43  ;;  %v696_v55 = vld [vmem:[%s4000_s15 + $0x1c8] sm:$0xff]  ;;  %v702_v60 = vld [vmem:[%s4000_s15 + $0x1f8] sm:$0xff]  ;;  %v715_v43 = vsub.s32 2, %v706_v12 }
  0x4b   : > { %3027 = vmatprep.subr.bf16.mxu1 %v4082_v53  ;;  %2997 = vmatpush1.bf16.msra.mxu0 %v4084_v54  ;;  %v625_v48 = vld [vmem:[%s4022_s28 + $0x30] sm:$0xff]  ;;  %v700_v56 = vld [vmem:[%s4000_s15 + $0x1e8] sm:$0xff]  ;;  %v4191_v59 = vpack.c.bf16 %v693_v47, %v689_v46  ;;  %v695_v61 = vld [vmem:[%s4000_s15 + $0x1c0] sm:$0xff]  ;;  %v4207_v7 = vpack.c.bf16 %v702_v60, %v698_v57 }
  0x4c   : > { %3029 = vmatpush1.bf16.msra.mxu1 %v4091_v58  ;;  %832 = vmatprep.mubr.f32.mxu0 %v3846_v0  ;;  %v699_v62 = vld [vmem:[%s4000_s15 + $0x1e0] sm:$0xff]  ;;  %v697_v63 = vld [vmem:[%s4000_s15 + $0x1d0] sm:$0xff]  ;;  %v626_v5 = vld [vmem:[%s4022_s28 + $0x38] sm:$0xff]  ;;  %v4203_v6 = vpack.c.bf16 %v700_v56, %v696_v55 }
  0x4d   : > { %945 = vmatprep.mubr.f32.mxu1 %v3846_v0  ;;  %2831 = vmatmul.mubr.msk.f32.gmra.mrb[6].mxu0 %vm725_vm0, %v622_v1  ;;  %v4209_v9 = vpack.c.bf16 %v699_v62, %v695_v61 }
  0x4e   : > { %2839 = vmatmul.mubr.msk.f32.gmra.mrb[6].mxu1 %vm725_vm0, %v622_v1  ;;  %2999 = vmatprep.subr.bf16.mxu0 %v4103_v2  ;;  %v701_v1 = vld [vmem:[%s4000_s15 + $0x1f0] sm:$0xff]  ;;  %s2879_s15 = sshll.u32 %s4655_s25, 7 }
  0x4f   : > { %3031 = vmatprep.subr.bf16.mxu1 %v4107_v3  ;;  %3001 = vmatpush1.bf16.msra.mxu0 %v4109_v4  ;;  %v4213_v10 = vpack.c.bf16 %v701_v1, %v697_v63  ;;  %s4535_s21 = scalar_lea.vmem %s4638_s4, %s2879_s15  ;;  %s595_s15 = scalar_lea.vmem %s4640_s6, %s4655_s25 }
  0x50   : > { %3033 = vmatpush1.bf16.msra.mxu1 %v4116_v8  ;;  %838 = vmatprep.mubr.f32.mxu0 %v3846_v0 }
  0x51   : > { %951 = vmatprep.mubr.f32.mxu1 %v3846_v0  ;;  %2832 = vmatmul.mubr.msk.f32.gmra.mrb[8].mxu0 %vm725_vm0, %v623_v14 }
  0x52   : > { %2840 = vmatmul.mubr.msk.f32.gmra.mrb[8].mxu1 %vm725_vm0, %v623_v14  ;;  %3003 = vmatprep.subr.bf16.mxu0 %v4128_v15  ;;  %v703_v14 = vld [vmem:[%s584_s14] sm:$0xf]  ;;  %s614_s14 = scalar_lea.vmem %s4645_s11, %s4655_s25 }
  0x53   : > { %3035 = vmatprep.subr.bf16.mxu1 %v4132_v16  ;;  %3005 = vmatpush1.bf16.msra.mxu0 %v4134_v17  ;;  %v4266_v19 = vrot.slane %v703_v14, %v707_v13  ;;  %v4268_v20 = vrot.slane %v703_v14, %v711_v18  ;;  %v4272_v42 = vrot.slane %v703_v14, %v719_v24 }
  0x54   : > { %3037 = vmatpush1.bf16.msra.mxu1 %v4141_v21  ;;  %844 = vmatprep.mubr.f32.mxu0 %v3846_v0  ;;  %v4275_v46 = vrot.slane %v703_v14, %v715_v43 }
  0x55   : > { %957 = vmatprep.mubr.f32.mxu1 %v3846_v0  ;;  %2833 = vmatmul.mubr.msk.f32.gmra.mrb[10].mxu0 %vm725_vm0, %v624_v30 }
  0x56   : > { %2841 = vmatmul.mubr.msk.f32.gmra.mrb[10].mxu1 %vm725_vm0, %v624_v30  ;;  %3007 = vmatprep.subr.bf16.mxu0 %v4153_v32 }
  0x57   : > { %3039 = vmatprep.subr.bf16.mxu1 %v4157_v33  ;;  %3009 = vmatpush1.bf16.msra.mxu0 %v4159_v34 }
  0x58   : > { %3041 = vmatpush1.bf16.msra.mxu1 %v4166_v38  ;;  %850 = vmatprep.mubr.f32.mxu0 %v3846_v0 }
  0x59   : > { %963 = vmatprep.mubr.f32.mxu1 %v3846_v0  ;;  %2834 = vmatmul.mubr.msk.f32.gmra.mrb[12].mxu0 %vm725_vm0, %v625_v48 }
  0x5a   : > { %2842 = vmatmul.mubr.msk.f32.gmra.mrb[12].mxu1 %vm725_vm0, %v625_v48  ;;  %3011 = vmatprep.subr.bf16.mxu0 %v4178_v49 }
  0x5b   : > { %3043 = vmatprep.subr.bf16.mxu1 %v4182_v50  ;;  %3013 = vmatpush1.bf16.msra.mxu0 %v4184_v51 }
  0x5c   : > { %3045 = vmatpush1.bf16.msra.mxu1 %v4191_v59  ;;  %856 = vmatprep.mubr.f32.mxu0 %v3846_v0 }
  0x5d   : > { %969 = vmatprep.mubr.f32.mxu1 %v3846_v0  ;;  %2835 = vmatmul.mubr.msk.f32.gmra.mrb[14].mxu0 %vm725_vm0, %v626_v5 }
  0x5e   : > { %2843 = vmatmul.mubr.msk.f32.gmra.mrb[14].mxu1 %vm725_vm0, %v626_v5  ;;  %3015 = vmatprep.subr.bf16.mxu0 %v4203_v6 }
  0x5f   : > { %3047 = vmatprep.subr.bf16.mxu1 %v4207_v7  ;;  %3017 = vmatpush1.bf16.msra.mxu0 %v4209_v9 }
  0x60   : > { %3049 = vmatpush1.bf16.msra.mxu1 %v4213_v10  ;;  %1040 = vmatprep.mubr.f32.mxu0 %v3846_v0 }
  0x61   : > { %1111 = vmatprep.mubr.f32.mxu1 %v3846_v0  ;;  %3051 = vmatprep.subr.bf16.mxu0 %v4030_v23 }
  0x62   : > { %1041 = vmatmul.mubr.f32.vlgmr.msra.gmra.mrb[0].mxu0 %v3846_v0  ;;  %3083 = vmatprep.subr.bf16.mxu1 %v4035_v27 }
  0x63   : > { %1112 = vmatmul.mubr.f32.vlgmr.msra.gmra.mrb[0].mxu1 %v3846_v0  ;;  %3053 = vmatpush1.bf16.msra.mxu0 %v4037_v28 }
  0x64   : > { %3085 = vmatpush1.bf16.msra.mxu1 %v4041_v31  ;;  %3055 = vmatprep.subr.bf16.mxu0 %v4053_v39 }
  0x65   : > { %3087 = vmatprep.subr.bf16.mxu1 %v4057_v40  ;;  %1210 = vmatprep.mubr.f32.mxu0 %v3846_v0 }
  0x66   : > { %1281 = vmatprep.mubr.f32.mxu1 %v3846_v0 }
  0x67   : > { %3057 = vmatpush1.bf16.msra.mxu0 %v4059_v41 }
  0x68   : > { %3089 = vmatpush1.bf16.msra.mxu1 %v4066_v45  ;;  %3059 = vmatprep.subr.bf16.mxu0 %v4078_v52 }
  0x69   : > { %3091 = vmatprep.subr.bf16.mxu1 %v4082_v53 }
  0x6b   : > { %3061 = vmatpush1.bf16.msra.mxu0 %v4084_v54 }
  0x6c   : > { %3093 = vmatpush1.bf16.msra.mxu1 %v4091_v58  ;;  %3063 = vmatprep.subr.bf16.mxu0 %v4103_v2 }
  0x6d   : > { %3095 = vmatprep.subr.bf16.mxu1 %v4107_v3 }
  0x6f   : > { %3065 = vmatpush1.bf16.msra.mxu0 %v4109_v4 }
  0x70   : > { %3097 = vmatpush1.bf16.msra.mxu1 %v4116_v8  ;;  %3067 = vmatprep.subr.bf16.mxu0 %v4128_v15 }
  0x71   : > { %3099 = vmatprep.subr.bf16.mxu1 %v4132_v16 }
  0x73   : > { %3069 = vmatpush1.bf16.msra.mxu0 %v4134_v17 }
  0x74   : > { %3101 = vmatpush1.bf16.msra.mxu1 %v4141_v21  ;;  %3071 = vmatprep.subr.bf16.mxu0 %v4153_v32 }
  0x75   : > { %3103 = vmatprep.subr.bf16.mxu1 %v4157_v33 }
  0x77   : > { %3073 = vmatpush1.bf16.msra.mxu0 %v4159_v34 }
  0x78   : > { %3105 = vmatpush1.bf16.msra.mxu1 %v4166_v38  ;;  %3075 = vmatprep.subr.bf16.mxu0 %v4178_v49 }
  0x79   : > { %3107 = vmatprep.subr.bf16.mxu1 %v4182_v50 }
  0x7b   : > { %3077 = vmatpush1.bf16.msra.mxu0 %v4184_v51 }
  0x7c   : > { %3109 = vmatpush1.bf16.msra.mxu1 %v4191_v59  ;;  %3079 = vmatprep.subr.bf16.mxu0 %v4203_v6 }
  0x7d   : > { %3111 = vmatprep.subr.bf16.mxu1 %v4207_v7 }
  0x7f   : > { %3081 = vmatpush1.bf16.msra.mxu0 %v4209_v9 }
  0x80   : > { %3113 = vmatpush1.bf16.msra.mxu1 %v4213_v10  ;;  %3115 = vmatprep.subr.bf16.mxu0 %v4030_v23 }
  0x81   : > { %3147 = vmatprep.subr.bf16.mxu1 %v4035_v27 }
 0x135   : > { %v1042_v22 = vpop.f32.mrb[0].mxu0 }
 0x136   : > { %v3540_v25 = vadd.f32 %v1042_v22, %v4266_v19  ;;  %v1113_v26 = vpop.f32.mrb[0].mxu1  ;;  %v1044_v29 = vpop.f32.mrb[1].mxu0 }
 0x137   : > { %v3541_v30 = vadd.f32 %v1044_v29, %v4268_v20  ;;  %v1115_v35 = vpop.f32.mrb[1].mxu1  ;;  %v3556_v48 = vadd.f32 %v1113_v26, %v4275_v46 }
 0x138   : > { %v2844_v36 = vmul.f32 -1.442695, %v3540_v25  ;;  %v3557_v44 = vadd.f32 %v1115_v35, %v4272_v42 }
 0x139   : > { %v2845_v37 = vmul.f32 -1.442695, %v3541_v30 }
 0x13a   : > { %3649 = vpow2.f32 %v2844_v36  ;;  %v2846_v47 = vmul.f32 -1.442695, %v3557_v44 }
 0x13b   : > { %3651 = vpow2.f32 %v2845_v37 }
 0x13c   : > { %3653 = vpow2.f32 %v2846_v47 }
 0x13d   : > { %3655 = vtanh.f32 %v3556_v48 }
 0x144   : > { %v3650_v55 = vpop.eup %3649 }
 0x145   : > { %v3652_v56 = vpop.eup %3651  ;;  %v1125_v57 = vadd.f32 1.0, %v3650_v55 }
 0x146   : > { %v1131_v60 = vadd.f32 1.0, %v3652_v56  ;;  %v3654_v61 = vpop.eup %3653 }
 0x147   : > { %3657 = vrcp.f32 %v1125_v57  ;;  %v3656_v62 = vpop.eup %3655  ;;  %v1138_v11 = vadd.f32 1.0, %v3654_v61 }
 0x148   : > { %3659 = vrcp.f32 %v1131_v60 }
 0x149   : > { %3661 = vrcp.f32 %v1138_v11 }
 0x151   : > { %v3658_v63 = vpop.eup %3657 }
 0x152   : > { %v3660_v1 = vpop.eup %3659  ;;  %v1142_v5 = vmul.f32 %v3658_v63, %v3656_v62 }
 0x153   : > { %v1141_v12 = vmul.f32 0.0, %v3660_v1  ;;  %v3662_v14 = vpop.eup %3661 }
 0x155   : > { %v4278_v13 = vadd.f32 %v1142_v5, %v1141_v12 }
 0x157   : > { %3663 = vtanh.f32 %v4278_v13 }
 0x161   : > { %v3664_v18 = vpop.eup %3663 }
 0x162   : > { %v1145_v22 = vmul.f32 %v3664_v18, %v3662_v14 }
 0x164   : > { %1211 = vmatmul.mubr.f32.vlgmr.msra.gmra.mrb[2].mxu0 %v1145_v22  ;;  %1282 = vmatmul.mubr.f32.vlgmr.msra.gmra.mrb[2].mxu1 %v1145_v22 }
 0x165   : > { %3117 = vmatpush1.bf16.msra.mxu0 %v4037_v28  ;;  %3149 = vmatpush1.bf16.msra.mxu1 %v4041_v31 }
 0x166   : > { %3119 = vmatprep.subr.bf16.mxu0 %v4053_v39  ;;  %3151 = vmatprep.subr.bf16.mxu1 %v4057_v40 }
 0x167   : > { %1380 = vmatprep.mubr.f32.mxu0 %v3846_v0  ;;  %1451 = vmatprep.mubr.f32.mxu1 %v3846_v0 }
 0x169   : > { %3121 = vmatpush1.bf16.msra.mxu0 %v4059_v41  ;;  %3153 = vmatpush1.bf16.msra.mxu1 %v4066_v45 }
 0x16a   : > { %3123 = vmatprep.subr.bf16.mxu0 %v4078_v52  ;;  %3155 = vmatprep.subr.bf16.mxu1 %v4082_v53 }
 0x16d   : > { %3125 = vmatpush1.bf16.msra.mxu0 %v4084_v54  ;;  %3157 = vmatpush1.bf16.msra.mxu1 %v4091_v58 }
 0x16e   : > { %3127 = vmatprep.subr.bf16.mxu0 %v4103_v2  ;;  %3159 = vmatprep.subr.bf16.mxu1 %v4107_v3 }
 0x171   : > { %3129 = vmatpush1.bf16.msra.mxu0 %v4109_v4  ;;  %3161 = vmatpush1.bf16.msra.mxu1 %v4116_v8 }
 0x172   : > { %3131 = vmatprep.subr.bf16.mxu0 %v4128_v15  ;;  %3163 = vmatprep.subr.bf16.mxu1 %v4132_v16 }
 0x175   : > { %3133 = vmatpush1.bf16.msra.mxu0 %v4134_v17  ;;  %3165 = vmatpush1.bf16.msra.mxu1 %v4141_v21 }
 0x176   : > { %3135 = vmatprep.subr.bf16.mxu0 %v4153_v32  ;;  %3167 = vmatprep.subr.bf16.mxu1 %v4157_v33 }
 0x179   : > { %3137 = vmatpush1.bf16.msra.mxu0 %v4159_v34  ;;  %3169 = vmatpush1.bf16.msra.mxu1 %v4166_v38 }
 0x17a   : > { %3139 = vmatprep.subr.bf16.mxu0 %v4178_v49  ;;  %3171 = vmatprep.subr.bf16.mxu1 %v4182_v50 }
 0x17d   : > { %3141 = vmatpush1.bf16.msra.mxu0 %v4184_v51  ;;  %3173 = vmatpush1.bf16.msra.mxu1 %v4191_v59 }
 0x17e   : > { %3143 = vmatprep.subr.bf16.mxu0 %v4203_v6  ;;  %3175 = vmatprep.subr.bf16.mxu1 %v4207_v7 }
 0x181   : > { %3145 = vmatpush1.bf16.msra.mxu0 %v4209_v9  ;;  %3177 = vmatpush1.bf16.msra.mxu1 %v4213_v10 }
 0x182   : > { %3179 = vmatprep.subr.bf16.mxu0 %v4030_v23  ;;  %3211 = vmatprep.subr.bf16.mxu1 %v4035_v27 }
 0x237   : > { %v1212_v24 = vpop.f32.mrb[2].mxu0  ;;  %v1283_v25 = vpop.f32.mrb[2].mxu1 }
 0x238   : > { %v3542_v26 = vadd.f32 %v1212_v24, %v4266_v19  ;;  %v1214_v29 = vpop.f32.mrb[3].mxu0  ;;  %v1285_v30 = vpop.f32.mrb[3].mxu1  ;;  %v3558_v47 = vadd.f32 %v1283_v25, %v4275_v46 }
 0x239   : > { %v3543_v35 = vadd.f32 %v1214_v29, %v4268_v20  ;;  %v3559_v43 = vadd.f32 %v1285_v30, %v4272_v42 }
 0x23a   : > { %v2847_v36 = vmul.f32 -1.442695, %v3542_v26 }
 0x23b   : > { %v2848_v37 = vmul.f32 -1.442695, %v3543_v35  ;;  %v2849_v44 = vmul.f32 -1.442695, %v3559_v43 }
 0x23c   : > { %3665 = vpow2.f32 %v2847_v36 }
 0x23d   : > { %3667 = vpow2.f32 %v2848_v37 }
 0x23e   : > { %3669 = vpow2.f32 %v2849_v44 }
 0x23f   : > { %3671 = vtanh.f32 %v3558_v47 }
 0x246   : > { %v3666_v48 = vpop.eup %3665 }
 0x247   : > { %v3668_v55 = vpop.eup %3667  ;;  %v1295_v56 = vadd.f32 1.0, %v3666_v48 }
 0x248   : > { %v1301_v57 = vadd.f32 1.0, %v3668_v55  ;;  %v3670_v60 = vpop.eup %3669 }
 0x249   : > { %3673 = vrcp.f32 %v1295_v56  ;;  %v3672_v61 = vpop.eup %3671  ;;  %v1308_v5 = vadd.f32 1.0, %v3670_v60 }
 0x24a   : > { %3675 = vrcp.f32 %v1301_v57 }
 0x24b   : > { %3677 = vrcp.f32 %v1308_v5 }
 0x253   : > { %v3674_v62 = vpop.eup %3673 }
 0x254   : > { %v3676_v63 = vpop.eup %3675  ;;  %v1312_v1 = vmul.f32 %v3674_v62, %v3672_v61 }
 0x255   : > { %v1311_v11 = vmul.f32 %v3676_v63, %v4278_v13  ;;  %v3678_v14 = vpop.eup %3677 }
 0x257   : > { %v4320_v12 = vadd.f32 %v1312_v1, %v1311_v11 }
 0x259   : > { %3679 = vtanh.f32 %v4320_v12 }
 0x263   : > { %v3680_v18 = vpop.eup %3679 }
 0x264   : > { %v1315_v22 = vmul.f32 %v3680_v18, %v3678_v14 }
 0x266   : > { %1381 = vmatmul.mubr.f32.vlgmr.msra.gmra.mrb[4].mxu0 %v1315_v22  ;;  %1452 = vmatmul.mubr.f32.vlgmr.msra.gmra.mrb[4].mxu1 %v1315_v22 }
 0x267   : > { %3181 = vmatpush1.bf16.msra.mxu0 %v4037_v28  ;;  %3213 = vmatpush1.bf16.msra.mxu1 %v4041_v31 }
 0x268   : > { %3183 = vmatprep.subr.bf16.mxu0 %v4053_v39  ;;  %3215 = vmatprep.subr.bf16.mxu1 %v4057_v40 }
 0x269   : > { %1550 = vmatprep.mubr.f32.mxu0 %v3846_v0  ;;  %1621 = vmatprep.mubr.f32.mxu1 %v3846_v0 }
 0x26b   : > { %3185 = vmatpush1.bf16.msra.mxu0 %v4059_v41  ;;  %3217 = vmatpush1.bf16.msra.mxu1 %v4066_v45 }
 0x26c   : > { %3187 = vmatprep.subr.bf16.mxu0 %v4078_v52  ;;  %3219 = vmatprep.subr.bf16.mxu1 %v4082_v53 }
 0x26f   : > { %3189 = vmatpush1.bf16.msra.mxu0 %v4084_v54  ;;  %3221 = vmatpush1.bf16.msra.mxu1 %v4091_v58 }
 0x270   : > { %3191 = vmatprep.subr.bf16.mxu0 %v4103_v2  ;;  %3223 = vmatprep.subr.bf16.mxu1 %v4107_v3 }
 0x273   : > { %3193 = vmatpush1.bf16.msra.mxu0 %v4109_v4  ;;  %3225 = vmatpush1.bf16.msra.mxu1 %v4116_v8 }
 0x274   : > { %3195 = vmatprep.subr.bf16.mxu0 %v4128_v15  ;;  %3227 = vmatprep.subr.bf16.mxu1 %v4132_v16 }
 0x277   : > { %3197 = vmatpush1.bf16.msra.mxu0 %v4134_v17  ;;  %3229 = vmatpush1.bf16.msra.mxu1 %v4141_v21 }
 0x278   : > { %3199 = vmatprep.subr.bf16.mxu0 %v4153_v32  ;;  %3231 = vmatprep.subr.bf16.mxu1 %v4157_v33 }
 0x27b   : > { %3201 = vmatpush1.bf16.msra.mxu0 %v4159_v34  ;;  %3233 = vmatpush1.bf16.msra.mxu1 %v4166_v38 }
 0x27c   : > { %3203 = vmatprep.subr.bf16.mxu0 %v4178_v49  ;;  %3235 = vmatprep.subr.bf16.mxu1 %v4182_v50 }
 0x27f   : > { %3205 = vmatpush1.bf16.msra.mxu0 %v4184_v51  ;;  %3237 = vmatpush1.bf16.msra.mxu1 %v4191_v59 }
 0x280   : > { %3207 = vmatprep.subr.bf16.mxu0 %v4203_v6  ;;  %3239 = vmatprep.subr.bf16.mxu1 %v4207_v7 }
 0x283   : > { %3209 = vmatpush1.bf16.msra.mxu0 %v4209_v9  ;;  %3241 = vmatpush1.bf16.msra.mxu1 %v4213_v10 }
 0x284   : > { %3243 = vmatprep.subr.bf16.mxu0 %v4030_v23  ;;  %3275 = vmatprep.subr.bf16.mxu1 %v4035_v27 }
 0x339   : > { %v1382_v13 = vpop.f32.mrb[4].mxu0  ;;  %v1453_v24 = vpop.f32.mrb[4].mxu1 }
 0x33a   : > { %v3544_v25 = vadd.f32 %v1382_v13, %v4266_v19  ;;  %v1384_v26 = vpop.f32.mrb[5].mxu0  ;;  %v1455_v29 = vpop.f32.mrb[5].mxu1  ;;  %v3560_v44 = vadd.f32 %v1453_v24, %v4275_v46 }
 0x33b   : > { %v3545_v30 = vadd.f32 %v1384_v26, %v4268_v20  ;;  %v3561_v37 = vadd.f32 %v1455_v29, %v4272_v42 }
 0x33c   : > { %v2850_v35 = vmul.f32 -1.442695, %v3544_v25 }
 0x33d   : > { %v2851_v36 = vmul.f32 -1.442695, %v3545_v30  ;;  %v2852_v43 = vmul.f32 -1.442695, %v3561_v37 }
 0x33e   : > { %3681 = vpow2.f32 %v2850_v35 }
 0x33f   : > { %3683 = vpow2.f32 %v2851_v36 }
 0x340   : > { %3685 = vpow2.f32 %v2852_v43 }
 0x341   : > { %3687 = vtanh.f32 %v3560_v44 }
 0x348   : > { %v3682_v47 = vpop.eup %3681 }
 0x349   : > { %v3684_v48 = vpop.eup %3683  ;;  %v1465_v55 = vadd.f32 1.0, %v3682_v47 }
 0x34a   : > { %v1471_v56 = vadd.f32 1.0, %v3684_v48  ;;  %v3686_v57 = vpop.eup %3685 }
 0x34b   : > { %3689 = vrcp.f32 %v1465_v55  ;;  %v3688_v60 = vpop.eup %3687  ;;  %v1478_v1 = vadd.f32 1.0, %v3686_v57 }
 0x34c   : > { %3691 = vrcp.f32 %v1471_v56 }
 0x34d   : > { %3693 = vrcp.f32 %v1478_v1 }
 0x355   : > { %v3690_v61 = vpop.eup %3689 }
 0x356   : > { %v3692_v62 = vpop.eup %3691  ;;  %v1482_v63 = vmul.f32 %v3690_v61, %v3688_v60 }
 0x357   : > { %v1481_v5 = vmul.f32 %v3692_v62, %v4320_v12  ;;  %v3694_v14 = vpop.eup %3693 }
 0x359   : > { %v4362_v11 = vadd.f32 %v1482_v63, %v1481_v5 }
 0x35b   : > { %3695 = vtanh.f32 %v4362_v11 }
 0x365   : > { %v3696_v18 = vpop.eup %3695 }
 0x366   : > { %v1485_v22 = vmul.f32 %v3696_v18, %v3694_v14 }
 0x368   : > { %1551 = vmatmul.mubr.f32.vlgmr.msra.gmra.mrb[6].mxu0 %v1485_v22  ;;  %1622 = vmatmul.mubr.f32.vlgmr.msra.gmra.mrb[6].mxu1 %v1485_v22 }
 0x369   : > { %3245 = vmatpush1.bf16.msra.mxu0 %v4037_v28  ;;  %3277 = vmatpush1.bf16.msra.mxu1 %v4041_v31 }
 0x36a   : > { %3247 = vmatprep.subr.bf16.mxu0 %v4053_v39  ;;  %3279 = vmatprep.subr.bf16.mxu1 %v4057_v40 }
 0x36b   : > { %1720 = vmatprep.mubr.f32.mxu0 %v3846_v0  ;;  %1791 = vmatprep.mubr.f32.mxu1 %v3846_v0 }
 0x36d   : > { %3249 = vmatpush1.bf16.msra.mxu0 %v4059_v41  ;;  %3281 = vmatpush1.bf16.msra.mxu1 %v4066_v45 }
 0x36e   : > { %3251 = vmatprep.subr.bf16.mxu0 %v4078_v52  ;;  %3283 = vmatprep.subr.bf16.mxu1 %v4082_v53 }
 0x371   : > { %3253 = vmatpush1.bf16.msra.mxu0 %v4084_v54  ;;  %3285 = vmatpush1.bf16.msra.mxu1 %v4091_v58 }
 0x372   : > { %3255 = vmatprep.subr.bf16.mxu0 %v4103_v2  ;;  %3287 = vmatprep.subr.bf16.mxu1 %v4107_v3 }
 0x375   : > { %3257 = vmatpush1.bf16.msra.mxu0 %v4109_v4  ;;  %3289 = vmatpush1.bf16.msra.mxu1 %v4116_v8 }
 0x376   : > { %3259 = vmatprep.subr.bf16.mxu0 %v4128_v15  ;;  %3291 = vmatprep.subr.bf16.mxu1 %v4132_v16 }
 0x379   : > { %3261 = vmatpush1.bf16.msra.mxu0 %v4134_v17  ;;  %3293 = vmatpush1.bf16.msra.mxu1 %v4141_v21 }
 0x37a   : > { %3263 = vmatprep.subr.bf16.mxu0 %v4153_v32  ;;  %3295 = vmatprep.subr.bf16.mxu1 %v4157_v33 }
 0x37d   : > { %3265 = vmatpush1.bf16.msra.mxu0 %v4159_v34  ;;  %3297 = vmatpush1.bf16.msra.mxu1 %v4166_v38 }
 0x37e   : > { %3267 = vmatprep.subr.bf16.mxu0 %v4178_v49  ;;  %3299 = vmatprep.subr.bf16.mxu1 %v4182_v50 }
 0x381   : > { %3269 = vmatpush1.bf16.msra.mxu0 %v4184_v51  ;;  %3301 = vmatpush1.bf16.msra.mxu1 %v4191_v59 }
 0x382   : > { %3271 = vmatprep.subr.bf16.mxu0 %v4203_v6  ;;  %3303 = vmatprep.subr.bf16.mxu1 %v4207_v7 }
 0x385   : > { %3273 = vmatpush1.bf16.msra.mxu0 %v4209_v9  ;;  %3305 = vmatpush1.bf16.msra.mxu1 %v4213_v10 }
 0x386   : > { %3307 = vmatprep.subr.bf16.mxu0 %v4030_v23  ;;  %3339 = vmatprep.subr.bf16.mxu1 %v4035_v27 }
 0x43b   : > { %v1552_v12 = vpop.f32.mrb[6].mxu0  ;;  %v1623_v13 = vpop.f32.mrb[6].mxu1 }
 0x43c   : > { %v3546_v24 = vadd.f32 %v1552_v12, %v4266_v19  ;;  %v1554_v25 = vpop.f32.mrb[7].mxu0  ;;  %v1625_v26 = vpop.f32.mrb[7].mxu1  ;;  %v3562_v43 = vadd.f32 %v1623_v13, %v4275_v46 }
 0x43d   : > { %v3547_v29 = vadd.f32 %v1554_v25, %v4268_v20  ;;  %v3563_v36 = vadd.f32 %v1625_v26, %v4272_v42 }
 0x43e   : > { %v2853_v30 = vmul.f32 -1.442695, %v3546_v24 }
 0x43f   : > { %v2854_v35 = vmul.f32 -1.442695, %v3547_v29  ;;  %v2855_v37 = vmul.f32 -1.442695, %v3563_v36 }
 0x440   : > { %3697 = vpow2.f32 %v2853_v30 }
 0x441   : > { %3699 = vpow2.f32 %v2854_v35 }
 0x442   : > { %3701 = vpow2.f32 %v2855_v37 }
 0x443   : > { %3703 = vtanh.f32 %v3562_v43 }
 0x44a   : > { %v3698_v44 = vpop.eup %3697 }
 0x44b   : > { %v3700_v47 = vpop.eup %3699  ;;  %v1635_v48 = vadd.f32 1.0, %v3698_v44 }
 0x44c   : > { %v1641_v55 = vadd.f32 1.0, %v3700_v47  ;;  %v3702_v56 = vpop.eup %3701 }
 0x44d   : > { %3705 = vrcp.f32 %v1635_v48  ;;  %v3704_v57 = vpop.eup %3703  ;;  %v1648_v63 = vadd.f32 1.0, %v3702_v56 }
 0x44e   : > { %3707 = vrcp.f32 %v1641_v55 }
 0x44f   : > { %3709 = vrcp.f32 %v1648_v63 }
 0x457   : > { %v3706_v60 = vpop.eup %3705 }
 0x458   : > { %v3708_v61 = vpop.eup %3707  ;;  %v1652_v62 = vmul.f32 %v3706_v60, %v3704_v57 }
 0x459   : > { %v1651_v1 = vmul.f32 %v3708_v61, %v4362_v11  ;;  %v3710_v14 = vpop.eup %3709 }
 0x45b   : > { %v4404_v5 = vadd.f32 %v1652_v62, %v1651_v1 }
 0x45d   : > { %3711 = vtanh.f32 %v4404_v5 }
 0x467   : > { %v3712_v18 = vpop.eup %3711 }
 0x468   : > { %v1655_v22 = vmul.f32 %v3712_v18, %v3710_v14 }
 0x46a   : > { %1721 = vmatmul.mubr.f32.vlgmr.msra.gmra.mrb[8].mxu0 %v1655_v22  ;;  %1792 = vmatmul.mubr.f32.vlgmr.msra.gmra.mrb[8].mxu1 %v1655_v22 }
 0x46b   : > { %3309 = vmatpush1.bf16.msra.mxu0 %v4037_v28  ;;  %3341 = vmatpush1.bf16.msra.mxu1 %v4041_v31 }
 0x46c   : > { %3311 = vmatprep.subr.bf16.mxu0 %v4053_v39  ;;  %3343 = vmatprep.subr.bf16.mxu1 %v4057_v40 }
 0x46d   : > { %1890 = vmatprep.mubr.f32.mxu0 %v3846_v0  ;;  %1961 = vmatprep.mubr.f32.mxu1 %v3846_v0 }
 0x46f   : > { %3313 = vmatpush1.bf16.msra.mxu0 %v4059_v41  ;;  %3345 = vmatpush1.bf16.msra.mxu1 %v4066_v45 }
 0x470   : > { %3315 = vmatprep.subr.bf16.mxu0 %v4078_v52  ;;  %3347 = vmatprep.subr.bf16.mxu1 %v4082_v53 }
 0x473   : > { %3317 = vmatpush1.bf16.msra.mxu0 %v4084_v54  ;;  %3349 = vmatpush1.bf16.msra.mxu1 %v4091_v58 }
 0x474   : > { %3319 = vmatprep.subr.bf16.mxu0 %v4103_v2  ;;  %3351 = vmatprep.subr.bf16.mxu1 %v4107_v3 }
 0x477   : > { %3321 = vmatpush1.bf16.msra.mxu0 %v4109_v4  ;;  %3353 = vmatpush1.bf16.msra.mxu1 %v4116_v8 }
 0x478   : > { %3323 = vmatprep.subr.bf16.mxu0 %v4128_v15  ;;  %3355 = vmatprep.subr.bf16.mxu1 %v4132_v16 }
 0x47b   : > { %3325 = vmatpush1.bf16.msra.mxu0 %v4134_v17  ;;  %3357 = vmatpush1.bf16.msra.mxu1 %v4141_v21 }
 0x47c   : > { %3327 = vmatprep.subr.bf16.mxu0 %v4153_v32  ;;  %3359 = vmatprep.subr.bf16.mxu1 %v4157_v33 }
 0x47f   : > { %3329 = vmatpush1.bf16.msra.mxu0 %v4159_v34  ;;  %3361 = vmatpush1.bf16.msra.mxu1 %v4166_v38 }
 0x480   : > { %3331 = vmatprep.subr.bf16.mxu0 %v4178_v49  ;;  %3363 = vmatprep.subr.bf16.mxu1 %v4182_v50 }
 0x483   : > { %3333 = vmatpush1.bf16.msra.mxu0 %v4184_v51  ;;  %3365 = vmatpush1.bf16.msra.mxu1 %v4191_v59 }
 0x484   : > { %3335 = vmatprep.subr.bf16.mxu0 %v4203_v6  ;;  %3367 = vmatprep.subr.bf16.mxu1 %v4207_v7 }
 0x487   : > { %3337 = vmatpush1.bf16.msra.mxu0 %v4209_v9  ;;  %3369 = vmatpush1.bf16.msra.mxu1 %v4213_v10 }
 0x488   : > { %3371 = vmatprep.subr.bf16.mxu0 %v4030_v23  ;;  %3403 = vmatprep.subr.bf16.mxu1 %v4035_v27 }
 0x53d   : > { %v1722_v11 = vpop.f32.mrb[8].mxu0  ;;  %v1793_v12 = vpop.f32.mrb[8].mxu1 }
 0x53e   : > { %v3548_v13 = vadd.f32 %v1722_v11, %v4266_v19  ;;  %v1724_v24 = vpop.f32.mrb[9].mxu0  ;;  %v1795_v25 = vpop.f32.mrb[9].mxu1  ;;  %v3564_v37 = vadd.f32 %v1793_v12, %v4275_v46 }
 0x53f   : > { %v3549_v26 = vadd.f32 %v1724_v24, %v4268_v20  ;;  %v3565_v35 = vadd.f32 %v1795_v25, %v4272_v42 }
 0x540   : > { %v2856_v29 = vmul.f32 -1.442695, %v3548_v13 }
 0x541   : > { %v2857_v30 = vmul.f32 -1.442695, %v3549_v26  ;;  %v2858_v36 = vmul.f32 -1.442695, %v3565_v35 }
 0x542   : > { %3713 = vpow2.f32 %v2856_v29 }
 0x543   : > { %3715 = vpow2.f32 %v2857_v30 }
 0x544   : > { %3717 = vpow2.f32 %v2858_v36 }
 0x545   : > { %3719 = vtanh.f32 %v3564_v37 }
 0x54c   : > { %v3714_v43 = vpop.eup %3713 }
 0x54d   : > { %v3716_v44 = vpop.eup %3715  ;;  %v1805_v47 = vadd.f32 1.0, %v3714_v43 }
 0x54e   : > { %v1811_v48 = vadd.f32 1.0, %v3716_v44  ;;  %v3718_v55 = vpop.eup %3717 }
 0x54f   : > { %3721 = vrcp.f32 %v1805_v47  ;;  %v3720_v56 = vpop.eup %3719  ;;  %v1818_v62 = vadd.f32 1.0, %v3718_v55 }
 0x550   : > { %3723 = vrcp.f32 %v1811_v48 }
 0x551   : > { %3725 = vrcp.f32 %v1818_v62 }
 0x559   : > { %v3722_v57 = vpop.eup %3721 }
 0x55a   : > { %v3724_v60 = vpop.eup %3723  ;;  %v1822_v61 = vmul.f32 %v3722_v57, %v3720_v56 }
 0x55b   : > { %v1821_v63 = vmul.f32 %v3724_v60, %v4404_v5  ;;  %v3726_v14 = vpop.eup %3725 }
 0x55d   : > { %v4446_v1 = vadd.f32 %v1822_v61, %v1821_v63 }
 0x55f   : > { %3727 = vtanh.f32 %v4446_v1 }
 0x569   : > { %v3728_v18 = vpop.eup %3727 }
 0x56a   : > { %v1825_v22 = vmul.f32 %v3728_v18, %v3726_v14  ;;  %v2339_v18 = vld [vmem:[%s4535_s21 + $0x18] sm:$0xff] }
 0x56c   : > { %1891 = vmatmul.mubr.f32.vlgmr.msra.gmra.mrb[10].mxu0 %v1825_v22  ;;  %1962 = vmatmul.mubr.f32.vlgmr.msra.gmra.mrb[10].mxu1 %v1825_v22 }
 0x56d   : > { %3373 = vmatpush1.bf16.msra.mxu0 %v4037_v28  ;;  %3405 = vmatpush1.bf16.msra.mxu1 %v4041_v31 }
 0x56e   : > { %3375 = vmatprep.subr.bf16.mxu0 %v4053_v39  ;;  %3407 = vmatprep.subr.bf16.mxu1 %v4057_v40 }
 0x56f   : > { %2060 = vmatprep.mubr.f32.mxu0 %v3846_v0  ;;  %2131 = vmatprep.mubr.f32.mxu1 %v3846_v0 }
 0x571   : > { %3377 = vmatpush1.bf16.msra.mxu0 %v4059_v41  ;;  %3409 = vmatpush1.bf16.msra.mxu1 %v4066_v45 }
 0x572   : > { %3379 = vmatprep.subr.bf16.mxu0 %v4078_v52  ;;  %3411 = vmatprep.subr.bf16.mxu1 %v4082_v53 }
 0x575   : > { %3381 = vmatpush1.bf16.msra.mxu0 %v4084_v54  ;;  %3413 = vmatpush1.bf16.msra.mxu1 %v4091_v58 }
 0x576   : > { %3383 = vmatprep.subr.bf16.mxu0 %v4103_v2  ;;  %3415 = vmatprep.subr.bf16.mxu1 %v4107_v3 }
 0x579   : > { %3385 = vmatpush1.bf16.msra.mxu0 %v4109_v4  ;;  %3417 = vmatpush1.bf16.msra.mxu1 %v4116_v8 }
 0x57a   : > { %3387 = vmatprep.subr.bf16.mxu0 %v4128_v15  ;;  %3419 = vmatprep.subr.bf16.mxu1 %v4132_v16 }
 0x57d   : > { %3389 = vmatpush1.bf16.msra.mxu0 %v4134_v17  ;;  %3421 = vmatpush1.bf16.msra.mxu1 %v4141_v21 }
 0x57e   : > { %3391 = vmatprep.subr.bf16.mxu0 %v4153_v32  ;;  %3423 = vmatprep.subr.bf16.mxu1 %v4157_v33 }
 0x581   : > { %3393 = vmatpush1.bf16.msra.mxu0 %v4159_v34  ;;  %3425 = vmatpush1.bf16.msra.mxu1 %v4166_v38 }
 0x582   : > { %3395 = vmatprep.subr.bf16.mxu0 %v4178_v49  ;;  %3427 = vmatprep.subr.bf16.mxu1 %v4182_v50 }
 0x585   : > { %3397 = vmatpush1.bf16.msra.mxu0 %v4184_v51  ;;  %3429 = vmatpush1.bf16.msra.mxu1 %v4191_v59 }
 0x586   : > { %3399 = vmatprep.subr.bf16.mxu0 %v4203_v6  ;;  %3431 = vmatprep.subr.bf16.mxu1 %v4207_v7 }
 0x589   : > { %3401 = vmatpush1.bf16.msra.mxu0 %v4209_v9  ;;  %3433 = vmatpush1.bf16.msra.mxu1 %v4213_v10 }
 0x58a   : > { %3435 = vmatprep.subr.bf16.mxu0 %v4030_v23  ;;  %3467 = vmatprep.subr.bf16.mxu1 %v4035_v27 }
 0x63f   : > { %v1892_v5 = vpop.f32.mrb[10].mxu0  ;;  %v1963_v11 = vpop.f32.mrb[10].mxu1 }
 0x640   : > { %v3550_v12 = vadd.f32 %v1892_v5, %v4266_v19  ;;  %v1894_v13 = vpop.f32.mrb[11].mxu0  ;;  %v1965_v24 = vpop.f32.mrb[11].mxu1  ;;  %v3566_v36 = vadd.f32 %v1963_v11, %v4275_v46  ;;  %v2340_v5 = vld [vmem:[%s4535_s21 + $0x20] sm:$0xff]  ;;  %v2341_v11 = vld [vmem:[%s4535_s21 + $0x28] sm:$0xff] }
 0x641   : > { %v3551_v25 = vadd.f32 %v1894_v13, %v4268_v20  ;;  %v3567_v30 = vadd.f32 %v1965_v24, %v4272_v42  ;;  %v2342_v13 = vld [vmem:[%s4535_s21 + $0x30] sm:$0xff]  ;;  %v2343_v24 = vld [vmem:[%s4535_s21 + $0x38] sm:$0xff] }
 0x642   : > { %v2859_v26 = vmul.f32 -1.442695, %v3550_v12  ;;  %v3505_v12 = vpack.c.bf16 %v2341_v11, %v2340_v5 }
 0x643   : > { %v2860_v29 = vmul.f32 -1.442695, %v3551_v25  ;;  %v2861_v35 = vmul.f32 -1.442695, %v3567_v30  ;;  %v3508_v25 = vpack.c.bf16 %v2343_v24, %v2342_v13 }
 0x644   : > { %3729 = vpow2.f32 %v2859_v26  ;;  %v2344_v26 = vld [vmem:[%s4535_s21 + $0x40] sm:$0xff] }
 0x645   : > { %3731 = vpow2.f32 %v2860_v29  ;;  %v2345_v29 = vld [vmem:[%s4535_s21 + $0x48] sm:$0xff] }
 0x646   : > { %3733 = vpow2.f32 %v2861_v35  ;;  %v3511_v30 = vpack.c.bf16 %v2345_v29, %v2344_v26  ;;  %v2346_v35 = vld [vmem:[%s4535_s21 + $0x50] sm:$0xff] }
 0x647   : > { %3735 = vtanh.f32 %v3566_v36  ;;  %v2347_v36 = vld [vmem:[%s4535_s21 + $0x58] sm:$0xff] }
 0x64e   : > { %v3730_v23 = vpop.eup %3729 }
 0x64f   : > { %v3732_v37 = vpop.eup %3731  ;;  %v1975_v27 = vadd.f32 1.0, %v3730_v23  ;;  %v2348_v23 = vld [vmem:[%s4535_s21 + $0x60] sm:$0xff] }
 0x650   : > { %v1981_v43 = vadd.f32 1.0, %v3732_v37  ;;  %v3734_v44 = vpop.eup %3733  ;;  %v3514_v37 = vpack.c.bf16 %v2347_v36, %v2346_v35 }
 0x651   : > { %3737 = vrcp.f32 %v1975_v27  ;;  %v3736_v47 = vpop.eup %3735  ;;  %v1988_v57 = vadd.f32 1.0, %v3734_v44  ;;  %v2349_v27 = vld [vmem:[%s4535_s21 + $0x68] sm:$0xff]  ;;  %v2350_v44 = vld [vmem:[%s4535_s21 + $0x70] sm:$0xff] }
 0x652   : > { %3739 = vrcp.f32 %v1981_v43  ;;  %v3517_v43 = vpack.c.bf16 %v2349_v27, %v2348_v23 }
 0x653   : > { %3741 = vrcp.f32 %v1988_v57  ;;  %v2450_v57 = vld [vmem:[%s4571_s17 + $0x10] sm:$0xff] }
 0x65b   : > { %v3738_v48 = vpop.eup %3737 }
 0x65c   : > { %v3740_v55 = vpop.eup %3739  ;;  %v1992_v56 = vmul.f32 %v3738_v48, %v3736_v47  ;;  %v2351_v47 = vld [vmem:[%s4535_s21 + $0x78] sm:$0xff] }
 0x65d   : > { %v1991_v60 = vmul.f32 %v3740_v55, %v4446_v1  ;;  %v3742_v62 = vpop.eup %3741  ;;  %v2338_v1 = vld [vmem:[%s4535_s21 + $0x10] sm:$0xff]  ;;  %v3520_v48 = vpack.c.bf16 %v2351_v47, %v2350_v44  ;;  %v2448_v55 = vld [vmem:[%s4571_s17] sm:$0xff] }
 0x65e   : > { %v3502_v22 = vpack.c.bf16 %v2339_v18, %v2338_v1 }
 0x65f   : > { %v4488_v61 = vadd.f32 %v1992_v56, %v1991_v60  ;;  %v2449_v56 = vld [vmem:[%s4571_s17 + $0x8] sm:$0xff] }
 0x660   : > { %v3523_v60 = vpack.c.bf16 %v2449_v56, %v2448_v55 }
 0x661   : > { %3743 = vtanh.f32 %v4488_v61 }
 0x66b   : > { %v3744_v63 = vpop.eup %3743 }
 0x66c   : > { %v1995_v14 = vmul.f32 %v3744_v63, %v3742_v62 }
 0x66e   : > { %2061 = vmatmul.mubr.f32.vlgmr.msra.gmra.mrb[12].mxu0 %v1995_v14  ;;  %2132 = vmatmul.mubr.f32.vlgmr.msra.gmra.mrb[12].mxu1 %v1995_v14 }
 0x66f   : > { %3437 = vmatpush1.bf16.msra.mxu0 %v4037_v28  ;;  %3469 = vmatpush1.bf16.msra.mxu1 %v4041_v31 }
 0x670   : > { %3439 = vmatprep.subr.bf16.mxu0 %v4053_v39  ;;  %3471 = vmatprep.subr.bf16.mxu1 %v4057_v40 }
 0x671   : > { %2230 = vmatprep.mubr.f32.mxu0 %v3846_v0  ;;  %2301 = vmatprep.mubr.f32.mxu1 %v3846_v0 }
 0x673   : > { %3441 = vmatpush1.bf16.msra.mxu0 %v4059_v41  ;;  %3473 = vmatpush1.bf16.msra.mxu1 %v4066_v45 }
 0x674   : > { %3443 = vmatprep.subr.bf16.mxu0 %v4078_v52  ;;  %3475 = vmatprep.subr.bf16.mxu1 %v4082_v53 }
 0x677   : > { %3445 = vmatpush1.bf16.msra.mxu0 %v4084_v54  ;;  %3477 = vmatpush1.bf16.msra.mxu1 %v4091_v58 }
 0x678   : > { %3447 = vmatprep.subr.bf16.mxu0 %v4103_v2  ;;  %3479 = vmatprep.subr.bf16.mxu1 %v4107_v3 }
 0x67b   : > { %3449 = vmatpush1.bf16.msra.mxu0 %v4109_v4  ;;  %3481 = vmatpush1.bf16.msra.mxu1 %v4116_v8 }
 0x67c   : > { %3451 = vmatprep.subr.bf16.mxu0 %v4128_v15  ;;  %3483 = vmatprep.subr.bf16.mxu1 %v4132_v16 }
 0x67f   : > { %3453 = vmatpush1.bf16.msra.mxu0 %v4134_v17  ;;  %3485 = vmatpush1.bf16.msra.mxu1 %v4141_v21 }
 0x680   : > { %3455 = vmatprep.subr.bf16.mxu0 %v4153_v32  ;;  %3487 = vmatprep.subr.bf16.mxu1 %v4157_v33 }
 0x683   : > { %3457 = vmatpush1.bf16.msra.mxu0 %v4159_v34  ;;  %3489 = vmatpush1.bf16.msra.mxu1 %v4166_v38 }
 0x684   : > { %3459 = vmatprep.subr.bf16.mxu0 %v4178_v49  ;;  %3491 = vmatprep.subr.bf16.mxu1 %v4182_v50 }
 0x687   : > { %3461 = vmatpush1.bf16.msra.mxu0 %v4184_v51  ;;  %3493 = vmatpush1.bf16.msra.mxu1 %v4191_v59 }
 0x688   : > { %3463 = vmatprep.subr.bf16.mxu0 %v4203_v6  ;;  %3495 = vmatprep.subr.bf16.mxu1 %v4207_v7  ;;  %v2336_v6 = vld [vmem:[%s4535_s21] sm:$0xff]  ;;  %v2337_v7 = vld [vmem:[%s4535_s21 + $0x8] sm:$0xff]  ;;  %s611_s21 = scalar_lea.vmem %s4644_s10, %s2881_s19 }
 0x689   : > { %v2540_v5 = vld [vmem:[%s611_s21] sm:$0xff]  ;;  %v2541_v11 = vld [vmem:[%s611_s21 + $0x8] sm:$0xff]  ;;  %v2542_v29 = vld [vmem:[%s611_s21 + $0x10] sm:$0xff] }
 0x68b   : > { %3465 = vmatpush1.bf16.msra.mxu0 %v4209_v9  ;;  %3497 = vmatpush1.bf16.msra.mxu1 %v4213_v10  ;;  %v3499_v9 = vpack.c.bf16 %v2337_v7, %v2336_v6  ;;  %v3847_v10 = vmov 0.0|0.0   ;;  %v2868_v6 = vld [vmem:[%s592_s16] ss:$0 sm:$0xff]  ;;  %s606_s16 = scalar_lea.vmem %s4643_s9, %s4655_s25 }
 0x68c   : > { %3498 = vmatprep.subr.bf16.mxu0 %v3847_v10  ;;  %3522 = vmatprep.subr.bf16.mxu1 %v3847_v10  ;;  %v2871_v36 = vld [vmem:[%s606_s16] ss:$0 sm:$0xff] }
 0x741   : > { %v2062_v28 = vpop.f32.mrb[12].mxu0  ;;  %v2133_v31 = vpop.f32.mrb[12].mxu1 }
 0x742   : > { %v3552_v39 = vadd.f32 %v2062_v28, %v4266_v19  ;;  %v2064_v40 = vpop.f32.mrb[13].mxu0  ;;  %v2135_v41 = vpop.f32.mrb[13].mxu1  ;;  %v3568_v2 = vadd.f32 %v2133_v31, %v4275_v46 }
 0x743   : > { %v3553_v45 = vadd.f32 %v2064_v40, %v4268_v20  ;;  %v3569_v54 = vadd.f32 %v2135_v41, %v4272_v42 }
 0x744   : > { %v2862_v52 = vmul.f32 -1.442695, %v3552_v39 }
 0x745   : > { %v2863_v53 = vmul.f32 -1.442695, %v3553_v45  ;;  %v2864_v58 = vmul.f32 -1.442695, %v3569_v54 }
 0x746   : > { %3745 = vpow2.f32 %v2862_v52 }
 0x747   : > { %3747 = vpow2.f32 %v2863_v53 }
 0x748   : > { %3749 = vpow2.f32 %v2864_v58 }
 0x749   : > { %3751 = vtanh.f32 %v3568_v2 }
 0x750   : > { %v3746_v3 = vpop.eup %3745 }
 0x751   : > { %v3748_v4 = vpop.eup %3747  ;;  %v2145_v8 = vadd.f32 1.0, %v3746_v3 }
 0x752   : > { %v2151_v15 = vadd.f32 1.0, %v3748_v4  ;;  %v3750_v16 = vpop.eup %3749 }
 0x753   : > { %3753 = vrcp.f32 %v2145_v8  ;;  %v3752_v17 = vpop.eup %3751  ;;  %v2158_v34 = vadd.f32 1.0, %v3750_v16 }
 0x754   : > { %3755 = vrcp.f32 %v2151_v15 }
 0x755   : > { %3757 = vrcp.f32 %v2158_v34  ;;  %v2452_v34 = vld [vmem:[%s4571_s17 + $0x20] sm:$0xff] }
 0x75d   : > { %v3754_v21 = vpop.eup %3753 }
 0x75e   : > { %v3756_v32 = vpop.eup %3755  ;;  %v2162_v33 = vmul.f32 %v3754_v21, %v3752_v17 }
 0x75f   : > { %v2161_v38 = vmul.f32 %v3756_v32, %v4488_v61  ;;  %v3758_v50 = vpop.eup %3757  ;;  %v2451_v61 = vld [vmem:[%s4571_s17 + $0x18] sm:$0xff] }
 0x760   : > { %v3526_v62 = vpack.c.bf16 %v2451_v61, %v2450_v57 }
 0x761   : > { %v4528_v49 = vadd.f32 %v2162_v33, %v2161_v38  ;;  %v2453_v38 = vld [vmem:[%s4571_s17 + $0x28] sm:$0xff] }
 0x763   : > { %3759 = vtanh.f32 %v4528_v49 }
 0x76d   : > { %v3760_v51 = vpop.eup %3759 }
 0x76e   : > { %v2165_v59 = vmul.f32 %v3760_v51, %v3758_v50  ;;  %v3529_v50 = vpack.c.bf16 %v2453_v38, %v2452_v34  ;;  %v2454_v51 = vld [vmem:[%s4571_s17 + $0x30] sm:$0xff] }
 0x770   : > { %2231 = vmatmul.mubr.f32.vlgmr.msra.gmra.mrb[14].mxu0 %v2165_v59  ;;  %2302 = vmatmul.mubr.f32.vlgmr.msra.gmra.mrb[14].mxu1 %v2165_v59  ;;  %v2455_v59 = vld [vmem:[%s4571_s17 + $0x38] sm:$0xff]  ;;  %s598_s17 = scalar_lea.vmem %s4641_s7, %s4655_s25 }
 0x771   : > { %3500 = vmatpush3.bf16.msra.mxu0 %v3499_v9  ;;  %2945 = vmatprep.mubr.msk.f32.mxu0 %vm3848_vm1, %v3846_v0  ;;  %v2870_v13 = vld [vmem:[%s598_s17] ss:$0 sm:$0xff] }
 0x772   : > { %3501 = vmatprep.subr.bf16.mxu0 %v3847_v10  ;;  %2964 = vmatprep.mubr.msk.f32.mxu1 %vm3848_vm1, %v3846_v0 }
 0x773   : > { %3524 = vmatpush3.bf16.msra.mxu1 %v3523_v60 }
 0x774   : > { %3525 = vmatprep.subr.bf16.mxu1 %v3847_v10 }
 0x775   : > { %3503 = vmatpush3.bf16.msra.mxu0 %v3502_v22  ;;  %v2869_v22 = vld [vmem:[%s595_s15] ss:$0 sm:$0xff]  ;;  %s2827_s15 = sshll.u32 %s4655_s25, 1 }
 0x776   : > { %3504 = vmatprep.subr.bf16.mxu0 %v3847_v10 }
 0x777   : > { %3527 = vmatpush3.bf16.msra.mxu1 %v3526_v62 }
 0x778   : > { %3528 = vmatprep.subr.bf16.mxu1 %v3847_v10 }
 0x779   : > { %3506 = vmatpush3.bf16.msra.mxu0 %v3505_v12 }
 0x77a   : > { %3507 = vmatprep.subr.bf16.mxu0 %v3847_v10 }
 0x77b   : > { %3530 = vmatpush3.bf16.msra.mxu1 %v3529_v50 }
 0x77c   : > { %3531 = vmatprep.subr.bf16.mxu1 %v3847_v10 }
 0x77d   : > { %3509 = vmatpush3.bf16.msra.mxu0 %v3508_v25  ;;  %v3535_v25 = vpack.c.bf16 %v2541_v11, %v2540_v5 }
 0x77e   : > { %3510 = vmatprep.subr.bf16.mxu0 %v3847_v10 }
 0x781   : > { %3512 = vmatpush3.bf16.msra.mxu0 %v3511_v30  ;;  %v2543_v30 = vld [vmem:[%s611_s21 + $0x18] sm:$0xff]  ;;  %s618_s21 = scalar_lea.vmem %s4646_s12, %s2827_s15 }
 0x782   : > { %3513 = vmatprep.subr.bf16.mxu0 %v3847_v10  ;;  %v3538_v35 = vpack.c.bf16 %v2543_v30, %v2542_v29 }
 0x785   : > { %3515 = vmatpush3.bf16.msra.mxu0 %v3514_v37 }
 0x786   : > { %3516 = vmatprep.subr.bf16.mxu0 %v3847_v10 }
 0x789   : > { %3518 = vmatpush3.bf16.msra.mxu0 %v3517_v43 }
 0x78a   : > { %3519 = vmatprep.subr.bf16.mxu0 %v3847_v10 }
 0x78d   : > { %3521 = vmatpush3.bf16.msra.mxu0 %v3520_v48 }
 0x843   : > { %v2232_v63 = vpop.f32.mrb[14].mxu0  ;;  %v2303_v14 = vpop.f32.mrb[14].mxu1 }
 0x844   : > { %v3554_v28 = vadd.f32 %v2232_v63, %v4266_v19  ;;  %v2234_v31 = vpop.f32.mrb[15].mxu0  ;;  %v2305_v39 = vpop.f32.mrb[15].mxu1  ;;  %v3570_v54 = vadd.f32 %v2303_v14, %v4275_v46 }
 0x845   : > { %v3555_v40 = vadd.f32 %v2234_v31, %v4268_v20  ;;  %v3571_v52 = vadd.f32 %v2305_v39, %v4272_v42 }
 0x846   : > { %v2865_v41 = vmul.f32 -1.442695, %v3554_v28 }
 0x847   : > { %v2866_v45 = vmul.f32 -1.442695, %v3555_v40  ;;  %v2867_v53 = vmul.f32 -1.442695, %v3571_v52 }
 0x848   : > { %3761 = vpow2.f32 %v2865_v41 }
 0x849   : > { %3763 = vpow2.f32 %v2866_v45 }
 0x84a   : > { %3765 = vpow2.f32 %v2867_v53 }
 0x84b   : > { %3767 = vtanh.f32 %v3570_v54 }
 0x852   : > { %v3762_v58 = vpop.eup %3761 }
 0x853   : > { %v3764_v2 = vpop.eup %3763  ;;  %v2315_v3 = vadd.f32 1.0, %v3762_v58 }
 0x854   : > { %v2321_v4 = vadd.f32 1.0, %v3764_v2  ;;  %v3766_v19 = vpop.eup %3765 }
 0x855   : > { %3769 = vrcp.f32 %v2315_v3  ;;  %v3768_v20 = vpop.eup %3767  ;;  %v2328_v42 = vadd.f32 1.0, %v3766_v19 }
 0x856   : > { %3771 = vrcp.f32 %v2321_v4 }
 0x857   : > { %3773 = vrcp.f32 %v2328_v42 }
 0x85f   : > { %v3770_v8 = vpop.eup %3769 }
 0x860   : > { %v3772_v15 = vpop.eup %3771  ;;  %v2332_v16 = vmul.f32 %v3770_v8, %v3768_v20 }
 0x861   : > { %v2331_v46 = vmul.f32 %v3772_v15, %v4528_v49  ;;  %v3774_v21 = vpop.eup %3773  ;;  %v3532_v49 = vpack.c.bf16 %v2455_v59, %v2454_v51 }
 0x863   : > { %v2333_v17 = vadd.f32 %v2332_v16, %v2331_v46  ;;  %3533 = vmatpush3.bf16.msra.mxu1 %v3532_v49 }
 0x864   : > { %3534 = vmatprep.subr.bf16.mxu1 %v3847_v10 }
 0x865   : > { %3775 = vtanh.f32 %v2333_v17 }
 0x86f   : > { %v3776_v32 = vpop.eup %3775 }
 0x870   : > { %v2335_v33 = vmul.f32 %v3776_v32, %v3774_v21 }
 0x872   : > { %2946 = vmatmul.mubr.f32.vlgmr.msra.gmra.mrb[16].mxu0 %v2335_v33 }
 0x945   : > { %v2425_v7 = vpop.f32.mrb[16].mxu0 }
 0x946   : > { %v2426_v9 = vadd.f32 %v2868_v6, %v2425_v7  ;;  %v2947_v1 = vpop.f32.mrb[17].mxu0 }
 0x948   : > { %vm2429_vm2 = vcmp.gt.f32.partialorder %v2426_v9, 0.0  ;;  %v2430_v18 = vmul.f32 0.01, %v2426_v9 }
 0x94a   : > { %v2431_v12 = vsel %vm2429_vm2, %v2426_v9, %v2430_v18 }
 0x94b   : > { %v2439_v24 = vmul.f32 %v2869_v22, %v2431_v12 }
 0x94d   : > { %v2447_v26 = vadd.f32 %v2870_v13, %v2439_v24 }
 0x94f   : > { %2965 = vmatmul.mubr.msk.f32.vlgmr.msra.gmra.mrb[16].mxu1 %vm2463_vm3, %v2447_v26 }
 0x950   : > { %3536 = vmatpush3.bf16.msra.mxu1 %v3535_v25  ;;  %2975 = vmatprep.mubr.msk.f32.mxu1 %vm3848_vm1, %v3846_v0 }
 0x951   : > { %3537 = vmatprep.subr.bf16.mxu1 %v3847_v10  ;;  %v2873_v10 = vld [vmem:[%s614_s14] ss:$0 sm:$0xff] }
 0x954   : > { %3539 = vmatpush3.bf16.msra.mxu1 %v3538_v35 }
 0xa22   : > { %v2533_v23 = vpop.f32.mrb[16].mxu1 }
 0xa23   : > { %v2534_v37 = vadd.f32 %v2871_v36, %v2533_v23  ;;  %v2966_v27 = vpop.f32.mrb[17].mxu1 }
 0xa25   : > { %vm2537_vm4 = vcmp.gt.f32.partialorder %v2534_v37, 0.0  ;;  %v2538_v43 = vmul.f32 0.01, %v2534_v37 }
 0xa27   : > { %v2539_v0 = vsel %vm2537_vm4, %v2534_v37, %v2538_v43 }
 0xa28   : > { %2976 = vmatmul.mubr.msk.f32.vlgmr.msra.gmra.mrb[18].mxu1 %vm2551_vm5, %v2539_v0 }
 0xafb   : > { %v2621_v44 = vpop.f32.mrb[18].mxu1 }
 0xafc   : > { %v2622_v47 = vadd.f32 %v2873_v10, %v2621_v44  ;;  %v2977_v48 = vpop.f32.mrb[19].mxu1 }
 0xafe   : > { %2626 = vst.msk [vmem:[%s618_s21] sm:$0x3] %vm2625_vm6, %v2622_v47 }
 0xaff PF: > { %p22_p7 = scmp.ge.s32.totalorder %s3936_s26, 4   ;;  %s4650_s21 = smov %s3833_s22 }
 0xb00   : > { %s4651_s22 = smov %s3837_s23  ;;  %s4652_s23 = smov %s3946_s29 }
 0xb01   : > { %s4653_s24 = smov %s3936_s26  ;;  %24 = sbr.rel (!%p22_p7) target bundleno = 3 (0x3), region = 141 }
 0xb08   :  { %2646 = vsyncpa [#allocation3], 1 }
 0xb09   :  { %2648 = vsyncpa [#allocation3 + $0x1], 1 }

</bundles_post_ra>
